<compile_context>
chip_gen: v7x
topology: tpu7x:2x2x1
jax: 0.10.0
libtpu: 0.0.40
codegen_flags: <defaults>
</compile_context>

<pallas_src>
import math
from functools import partial

import jax
import jax.numpy as jnp
from jax.experimental import pallas as pl
from jax.experimental.pallas import tpu as pltpu

S_PAD = 128          # lane-dense padded width of the node_lin output
NEG_PAD = -1e30      # bias for padded logit columns (exp() underflows to 0)


# ---------------------------------------------------------------------------
# Fused kernel: embed (layer 0 only) + L GNN layers + log_softmax head
# ---------------------------------------------------------------------------

def _fused_kernel(node_prob_ref, node_seed_ref, edge_raw_ref,
                  snode2edge_ref, edge2tnode_ref,
                  w_node_ref, b_node_ref,
                  w_eemb_ref, b_eemb_ref,
                  w_init_ref, b_init_ref,
                  w_em_ref, w_ee_ref,
                  w_pass_ref, b_mm_ref,
                  w_i_ref, w_h_ref, b_gru_ref,
                  w_out_ref, b_out_ref,
                  marg_ref,
                  edge_feat_sc, msg_sc):
    l = pl.program_id(0)
    M = msg_sc.shape[1]

    # ---- one-time embedding (resident in VMEM scratch afterwards) ----------
    @pl.when(l == 0)
    def _():
        # node_emb: Linear(2, F) + ReLU on cat((node_prob, node_seed), dim=1);
        # the 2-wide contraction is two broadcast multiplies.
        nf = (node_prob_ref[...] * w_node_ref[0:1, :]
              + node_seed_ref[...] * w_node_ref[1:2, :] + b_node_ref[...])
        nf = jnp.maximum(nf, 0.0)                                   # [N, F]
        # edge_emb: Linear(1, Ef) + ReLU
        ef = edge_raw_ref[...] * w_eemb_ref[0:1, :] + b_eemb_ref[...]
        edge_feat_sc[...] = jnp.maximum(ef, 0.0)                    # [E, Ef]
        # init_lin: Linear(F, M) + ReLU
        msg = jnp.dot(nf, w_init_ref[...],
                      preferred_element_type=jnp.float32) + b_init_ref[...]
        msg_sc[...] = jnp.maximum(msg, 0.0)                         # [N, M]

    h = msg_sc[...]                                                 # [N, M]

    # ---- message passing ----------------------------------------------------
    # TODO(synk): for large graphs, replace this dense one-hot matmul with a
    # scalar-prefetch row gather (src indices in SMEM) and tile E/N with a
    # parallel grid for v7x's two TensorCores; at N=16/E=32 dense is cheaper.
    m_e = jnp.dot(snode2edge_ref[...], h,
                  preferred_element_type=jnp.float32)               # [E, M]

    # message_edge_lin(cat((message, edge_feat), dim=1)) split over weight halves
    z_e = (jnp.dot(m_e, w_em_ref[...], preferred_element_type=jnp.float32)
           + jnp.dot(edge_feat_sc[...], w_ee_ref[...],
                     preferred_element_type=jnp.float32)
           + b_mm_ref[0:1, :])
    z_e = jnp.maximum(z_e, 0.0)                                     # [E, M]

    # message_pass_lin(mm(edge2tnode, message))
    m_n = jnp.dot(edge2tnode_ref[...], z_e,
                  preferred_element_type=jnp.float32)               # [N, M]
    x = jnp.maximum(jnp.dot(m_n, w_pass_ref[...],
                            preferred_element_type=jnp.float32)
                    + b_mm_ref[1:2, :], 0.0)                        # [N, M]

    # ---- GRUCell(x, h), gates packed into two [M, 3M] matmuls (order r,z,n) --
    gi = jnp.dot(x, w_i_ref[...], preferred_element_type=jnp.float32) \
        + b_gru_ref[0:1, :]                                         # [N, 3M]
    gh = jnp.dot(h, w_h_ref[...], preferred_element_type=jnp.float32) \
        + b_gru_ref[1:2, :]                                         # [N, 3M]
    r = jax.nn.sigmoid(gi[:, 0:M] + gh[:, 0:M])
    zg = jax.nn.sigmoid(gi[:, M:2 * M] + gh[:, M:2 * M])
    n = jnp.tanh(gi[:, 2 * M:3 * M] + r * gh[:, 2 * M:3 * M])
    h_new = (1.0 - zg) * n + zg * h                                 # [N, M]
    msg_sc[...] = h_new

    # ---- node_lin + log_softmax (lane-dense padded to S_PAD) ----------------
    logits = jnp.dot(h_new, w_out_ref[...],
                     preferred_element_type=jnp.float32) + b_out_ref[...]
    m = jnp.max(logits, axis=1, keepdims=True)
    s = logits - m
    lse = jnp.log(jnp.sum(jnp.exp(s), axis=1, keepdims=True))
    marg_ref[...] = (s - lse)[None, :, :]                           # [1, N, S_PAD]


# ---------------------------------------------------------------------------
# pallas_call wrapper: single fused call over grid=(L,)
# ---------------------------------------------------------------------------

def _resident_spec(a):
    nd = a.ndim
    return pl.BlockSpec(a.shape, lambda l, _nd=nd: (0,) * _nd)


def _fused_forward_call(params, snode2edge, edge2tnode, edge_feat_raw,
                        node_prob, node_seed, number_layers):
    N = node_prob.shape[0]
    E = edge_feat_raw.shape[0]
    M = params["w_pass"].shape[0]
    Ef = params["w_eemb"].shape[1]
    L = number_layers

    args = (node_prob, node_seed, edge_feat_raw, snode2edge, edge2tnode,
            params["w_node"], params["b_node"],
            params["w_eemb"], params["b_eemb"],
            params["w_init"], params["b_init"],
            params["w_edge_m"], params["w_edge_e"],
            params["w_pass"], params["b_mm"],
            params["w_i"], params["w_h"], params["b_gru"],
            params["w_out"], params["b_out"])

    grid_spec = pltpu.PrefetchScalarGridSpec(
        num_scalar_prefetch=0,
        grid=(L,),
        in_specs=[_resident_spec(a) for a in args],
        out_specs=pl.BlockSpec((1, N, S_PAD), lambda l: (l, 0, 0)),
        scratch_shapes=[pltpu.VMEM((E, Ef), jnp.float32),   # edge_feat
                        pltpu.VMEM((N, M), jnp.float32)],   # message (GRU state)
    )

    return pl.pallas_call(
        _fused_kernel,
        out_shape=jax.ShapeDtypeStruct((L, N, S_PAD), jnp.float32),
        grid_spec=grid_spec,
        compiler_params=pltpu.CompilerParams(dimension_semantics=("arbitrary",)),
    )(*args)


@partial(jax.jit, static_argnames=("number_layers", "num_status"))
def _device_forward(params, snode2edge, edge2tnode, edge_feat_raw,
                    node_prob, node_seed, *, number_layers, num_status):
    marg_full = _fused_forward_call(params, snode2edge, edge2tnode,
                                    edge_feat_raw, node_prob, node_seed,
                                    number_layers)
    marginal = marg_full[:, :, :num_status]                     # drop lane pad
    if number_layers > 1:
        probs = jnp.exp(marginal)
        deltas = jnp.max(jnp.abs(probs[1:] - probs[:-1]), axis=(1, 2))
    else:
        deltas = jnp.zeros((0,), jnp.float32)
    return marginal, deltas


def node_gnn_forward(params, inputs, number_layers, num_status):
    snode2edge, _, edge2tnode, _, edge_feat_raw, node_prob, node_seed = inputs
    marginal, deltas = _device_forward(
        params, snode2edge, edge2tnode, edge_feat_raw, node_prob, node_seed,
        number_layers=number_layers, num_status=num_status)

    # Single device->host sync for the whole forward; replicate PyTorch's
    # per-layer early-exit by truncating (earlier layers' values are identical).
    deltas_host = jax.device_get(deltas)
    message_delta = []
    keep = number_layers
    for l in range(number_layers):
        d = 1000.0 if l == 0 else float(deltas_host[l - 1])
        message_delta.append(d)
        if d < 5e-5:
            keep = l + 1
            break
    return marginal[:keep], message_delta


# ---------------------------------------------------------------------------
# Deterministic parameter init (PyTorch-shaped, stored [in, out], packed)
# ---------------------------------------------------------------------------

def init_params(key, num_status, node_feat_dim, edge_feat_dim, message_dim):
    keys = iter(jax.random.split(key, 48))

    def xavier(in_d, out_d):
        std = math.sqrt(2.0 / (in_d + out_d))
        return std * jax.random.normal(next(keys), (in_d, out_d), jnp.float32)

    def lin_bias(in_d, out_d):
        bound = 1.0 / math.sqrt(in_d)
        return jax.random.uniform(next(keys), (1, out_d), jnp.float32, -bound, bound)

    def gru_w(h):
        bound = 1.0 / math.sqrt(h)
        return jax.random.uniform(next(keys), (h, h), jnp.float32, -bound, bound)

    def gru_b(h):
        bound = 1.0 / math.sqrt(h)
        return jax.random.uniform(next(keys), (1, h), jnp.float32, -bound, bound)

    F, Ef, M, S = node_feat_dim, edge_feat_dim, message_dim, num_status
    p = {}
    # node_emb: Linear(2, F); edge_emb: Linear(1, Ef); init_lin: Linear(F, M)
    p["w_node"] = xavier(2, F);   p["b_node"] = lin_bias(2, F)
    p["w_eemb"] = xavier(1, Ef);  p["b_eemb"] = lin_bias(1, Ef)
    p["w_init"] = xavier(F, M);   p["b_init"] = lin_bias(F, M)
    # node_lin: Linear(M, S) padded to lane width S_PAD
    w_out = xavier(M, S)
    b_out = lin_bias(M, S)
    p["w_out"] = jnp.zeros((M, S_PAD), jnp.float32).at[:, :S].set(w_out)
    p["b_out"] = jnp.full((1, S_PAD), NEG_PAD, jnp.float32).at[:, :S].set(b_out)
    # message_edge_lin: Linear(Ef + M, M), input order cat((message, edge_feat))
    w_edge = xavier(M + Ef, M)
    p["w_edge_m"] = w_edge[:M, :]
    p["w_edge_e"] = w_edge[M:, :]
    b_edge = lin_bias(M + Ef, M)
    # message_pass_lin: Linear(M, M)
    p["w_pass"] = xavier(M, M)
    b_pass = lin_bias(M, M)
    p["b_mm"] = jnp.concatenate([b_edge, b_pass], axis=0)          # [2, M]
    # GRUCell(M, M): gate order r, z, n — packed into [M, 3M] / [2, 3M]
    p["w_i"] = jnp.concatenate([gru_w(M), gru_w(M), gru_w(M)], axis=1)
    p["w_h"] = jnp.concatenate([gru_w(M), gru_w(M), gru_w(M)], axis=1)
    b_i = jnp.concatenate([gru_b(M), gru_b(M), gru_b(M)], axis=1)
    b_h = jnp.concatenate([gru_b(M), gru_b(M), gru_b(M)], axis=1)
    p["b_gru"] = jnp.concatenate([b_i, b_h], axis=0)               # [2, 3M]
    return p


# ---------------------------------------------------------------------------
# main
# ---------------------------------------------------------------------------

if __name__ == "__main__":
    num_status = 4
    node_feat_dim = 16
    edge_feat_dim = 8
    message_dim = 32
    number_layers = 3
    N, E = 16, 32  # nodes, directed edges

    root = jax.random.PRNGKey(0)
    k_par, k_src, k_tgt, k_prob, k_seed, k_edge = jax.random.split(root, 6)

    params = init_params(k_par, num_status, node_feat_dim, edge_feat_dim,
                         message_dim)

    # Graph incidence matrices (dense, as torch.mm expects dense here).
    src = jax.random.randint(k_src, (E,), 0, N)
    tgt = jax.random.randint(k_tgt, (E,), 0, N)
    snode2edge = jax.nn.one_hot(src, N, dtype=jnp.float32)          # [E, N]
    edge2tnode = jax.nn.one_hot(tgt, N, dtype=jnp.float32).T        # [N, E]

    node_prob = jax.random.uniform(k_prob, (N, 1), jnp.float32)
    node_seed = (jax.random.uniform(k_seed, (N, 1)) > 0.8).astype(jnp.float32)
    edge_feat_raw = jax.random.uniform(k_edge, (E, 1), jnp.float32)

    inputs = (snode2edge, None, edge2tnode, None, edge_feat_raw,
              node_prob, node_seed)

    marginal, message_delta = node_gnn_forward(params, inputs, number_layers,
                                               num_status)
    marginal = jax.block_until_ready(marginal)

    assert marginal.ndim == 3 and marginal.shape[1:] == (N, num_status)
    assert marginal.dtype == jnp.float32
    assert len(message_delta) == marginal.shape[0]
    # log_softmax rows should sum (in prob space) to ~1
    assert bool(jnp.all(jnp.abs(jnp.sum(jnp.exp(marginal), axis=2) - 1.0) < 1e-4))

    print("KERNEL_OK")
</pallas_src>

<mosaic_0001>
module attributes {stable_mosaic.version = 11 : i64} {
  func.func @_fused_kernel(%arg0: i32, %arg1: memref<16x1xf32, #tpu.memory_space<vmem>>, %arg2: memref<16x1xf32, #tpu.memory_space<vmem>>, %arg3: memref<32x1xf32, #tpu.memory_space<vmem>>, %arg4: memref<32x16xf32, #tpu.memory_space<vmem>>, %arg5: memref<16x32xf32, #tpu.memory_space<vmem>>, %arg6: memref<2x16xf32, #tpu.memory_space<vmem>>, %arg7: memref<1x16xf32, #tpu.memory_space<vmem>>, %arg8: memref<1x8xf32, #tpu.memory_space<vmem>>, %arg9: memref<1x8xf32, #tpu.memory_space<vmem>>, %arg10: memref<16x32xf32, #tpu.memory_space<vmem>>, %arg11: memref<1x32xf32, #tpu.memory_space<vmem>>, %arg12: memref<32x32xf32, #tpu.memory_space<vmem>>, %arg13: memref<8x32xf32, #tpu.memory_space<vmem>>, %arg14: memref<32x32xf32, #tpu.memory_space<vmem>>, %arg15: memref<2x32xf32, #tpu.memory_space<vmem>>, %arg16: memref<32x96xf32, #tpu.memory_space<vmem>>, %arg17: memref<32x96xf32, #tpu.memory_space<vmem>>, %arg18: memref<2x96xf32, #tpu.memory_space<vmem>>, %arg19: memref<32x128xf32, #tpu.memory_space<vmem>>, %arg20: memref<1x128xf32, #tpu.memory_space<vmem>>, %arg21: memref<1x16x128xf32, #tpu.memory_space<vmem>>, %arg22: memref<32x8xf32, #tpu.memory_space<vmem>>, %arg23: memref<16x32xf32, #tpu.memory_space<vmem>>) attributes {dimension_semantics = [#tpu.dimension_semantics<arbitrary>], iteration_bounds = array<i64: 3>, scalar_prefetch = 0 : i64, scratch_operands = 2 : i64, tpu.core_type = #tpu.core_type<tc>, window_params = [{pipeline_mode = #tpu.pipeline_mode<synchronous>, transform_indices = @transform_0, window_bounds = array<i64: 16, 1>}, {pipeline_mode = #tpu.pipeline_mode<synchronous>, transform_indices = @transform_1, window_bounds = array<i64: 16, 1>}, {pipeline_mode = #tpu.pipeline_mode<synchronous>, transform_indices = @transform_2, window_bounds = array<i64: 32, 1>}, {pipeline_mode = #tpu.pipeline_mode<synchronous>, transform_indices = @transform_3, window_bounds = array<i64: 32, 16>}, {pipeline_mode = #tpu.pipeline_mode<synchronous>, transform_indices = @transform_4, window_bounds = array<i64: 16, 32>}, {pipeline_mode = #tpu.pipeline_mode<synchronous>, transform_indices = @transform_5, window_bounds = array<i64: 2, 16>}, {pipeline_mode = #tpu.pipeline_mode<synchronous>, transform_indices = @transform_6, window_bounds = array<i64: 1, 16>}, {pipeline_mode = #tpu.pipeline_mode<synchronous>, transform_indices = @transform_7, window_bounds = array<i64: 1, 8>}, {pipeline_mode = #tpu.pipeline_mode<synchronous>, transform_indices = @transform_8, window_bounds = array<i64: 1, 8>}, {pipeline_mode = #tpu.pipeline_mode<synchronous>, transform_indices = @transform_9, window_bounds = array<i64: 16, 32>}, {pipeline_mode = #tpu.pipeline_mode<synchronous>, transform_indices = @transform_10, window_bounds = array<i64: 1, 32>}, {pipeline_mode = #tpu.pipeline_mode<synchronous>, transform_indices = @transform_11, window_bounds = array<i64: 32, 32>}, {pipeline_mode = #tpu.pipeline_mode<synchronous>, transform_indices = @transform_12, window_bounds = array<i64: 8, 32>}, {pipeline_mode = #tpu.pipeline_mode<synchronous>, transform_indices = @transform_13, window_bounds = array<i64: 32, 32>}, {pipeline_mode = #tpu.pipeline_mode<synchronous>, transform_indices = @transform_14, window_bounds = array<i64: 2, 32>}, {pipeline_mode = #tpu.pipeline_mode<synchronous>, transform_indices = @transform_15, window_bounds = array<i64: 32, 96>}, {pipeline_mode = #tpu.pipeline_mode<synchronous>, transform_indices = @transform_16, window_bounds = array<i64: 32, 96>}, {pipeline_mode = #tpu.pipeline_mode<synchronous>, transform_indices = @transform_17, window_bounds = array<i64: 2, 96>}, {pipeline_mode = #tpu.pipeline_mode<synchronous>, transform_indices = @transform_18, window_bounds = array<i64: 32, 128>}, {pipeline_mode = #tpu.pipeline_mode<synchronous>, transform_indices = @transform_19, window_bounds = array<i64: 1, 128>}, {transform_indices = @transform_20, window_bounds = array<i64: 1, 16, 128>}]} {
    %c0_i32 = arith.constant 0 : i32
    %0 = arith.cmpi eq, %arg0, %c0_i32 : i32
    %1 = arith.extui %0 : i1 to i32
    %c0_i32_0 = arith.constant 0 : i32
    %2 = arith.cmpi ne, %1, %c0_i32_0 : i32
    scf.if %2 {
      %c0_48 = arith.constant 0 : index
      %c0_49 = arith.constant 0 : index
      %80 = vector.load %arg1[%c0_48, %c0_49] : memref<16x1xf32, #tpu.memory_space<vmem>>, vector<16x1xf32>
      %c0_50 = arith.constant 0 : index
      %c0_51 = arith.constant 0 : index
      %81 = vector.load %arg6[%c0_50, %c0_51] : memref<2x16xf32, #tpu.memory_space<vmem>>, vector<1x16xf32>
      %82 = vector.broadcast %80 : vector<16x1xf32> to vector<16x16xf32>
      %83 = vector.broadcast %81 : vector<1x16xf32> to vector<16x16xf32>
      %84 = arith.mulf %82, %83 : vector<16x16xf32>
      %c0_52 = arith.constant 0 : index
      %c0_53 = arith.constant 0 : index
      %85 = vector.load %arg2[%c0_52, %c0_53] : memref<16x1xf32, #tpu.memory_space<vmem>>, vector<16x1xf32>
      %c1_54 = arith.constant 1 : index
      %c0_55 = arith.constant 0 : index
      %86 = vector.load %arg6[%c1_54, %c0_55] : memref<2x16xf32, #tpu.memory_space<vmem>>, vector<1x16xf32>
      %87 = vector.broadcast %85 : vector<16x1xf32> to vector<16x16xf32>
      %88 = vector.broadcast %86 : vector<1x16xf32> to vector<16x16xf32>
      %89 = arith.mulf %87, %88 : vector<16x16xf32>
      %90 = arith.addf %84, %89 : vector<16x16xf32>
      %c0_56 = arith.constant 0 : index
      %c0_57 = arith.constant 0 : index
      %91 = vector.load %arg7[%c0_56, %c0_57] : memref<1x16xf32, #tpu.memory_space<vmem>>, vector<1x16xf32>
      %92 = vector.broadcast %91 : vector<1x16xf32> to vector<16x16xf32>
      %93 = arith.addf %90, %92 : vector<16x16xf32>
      %cst_58 = arith.constant 0.000000e+00 : f32
      %94 = vector.broadcast %cst_58 : f32 to vector<16x16xf32>
      %95 = arith.maximumf %93, %94 : vector<16x16xf32>
      %c0_59 = arith.constant 0 : index
      %c0_60 = arith.constant 0 : index
      %96 = vector.load %arg3[%c0_59, %c0_60] : memref<32x1xf32, #tpu.memory_space<vmem>>, vector<32x1xf32>
      %c0_61 = arith.constant 0 : index
      %c0_62 = arith.constant 0 : index
      %97 = vector.load %arg8[%c0_61, %c0_62] : memref<1x8xf32, #tpu.memory_space<vmem>>, vector<1x8xf32>
      %98 = vector.broadcast %96 : vector<32x1xf32> to vector<32x8xf32>
      %99 = vector.broadcast %97 : vector<1x8xf32> to vector<32x8xf32>
      %100 = arith.mulf %98, %99 : vector<32x8xf32>
      %c0_63 = arith.constant 0 : index
      %c0_64 = arith.constant 0 : index
      %101 = vector.load %arg9[%c0_63, %c0_64] : memref<1x8xf32, #tpu.memory_space<vmem>>, vector<1x8xf32>
      %102 = vector.broadcast %101 : vector<1x8xf32> to vector<32x8xf32>
      %103 = arith.addf %100, %102 : vector<32x8xf32>
      %cst_65 = arith.constant 0.000000e+00 : f32
      %104 = vector.broadcast %cst_65 : f32 to vector<32x8xf32>
      %105 = arith.maximumf %103, %104 : vector<32x8xf32>
      %c0_66 = arith.constant 0 : index
      %c0_67 = arith.constant 0 : index
      %106 = vector.load %arg22[%c0_66, %c0_67] : memref<32x8xf32, #tpu.memory_space<vmem>>, vector<32x8xf32>
      tpu.vector_store %arg22[%c0_66, %c0_67], %105 {strides = array<i32>} : memref<32x8xf32, #tpu.memory_space<vmem>>, vector<32x8xf32>,
      %c0_68 = arith.constant 0 : index
      %c0_69 = arith.constant 0 : index
      %107 = vector.load %arg10[%c0_68, %c0_69] : memref<16x32xf32, #tpu.memory_space<vmem>>, vector<16x32xf32>
      %cst_70 = arith.constant dense<0.000000e+00> : vector<16x32xf32>
      %108 = tpu.matmul %95, %107, %cst_70 {dimension_numbers = #tpu.dot_dimension_numbers<[1], [0], [0], [1], [0, 0, 1, 1], [], []>} : vector<16x16xf32>, vector<16x32xf32>, vector<16x32xf32> -> vector<16x32xf32>
      %c0_71 = arith.constant 0 : index
      %c0_72 = arith.constant 0 : index
      %109 = vector.load %arg11[%c0_71, %c0_72] : memref<1x32xf32, #tpu.memory_space<vmem>>, vector<1x32xf32>
      %110 = vector.broadcast %109 : vector<1x32xf32> to vector<16x32xf32>
      %111 = arith.addf %108, %110 : vector<16x32xf32>
      %cst_73 = arith.constant 0.000000e+00 : f32
      %112 = vector.broadcast %cst_73 : f32 to vector<16x32xf32>
      %113 = arith.maximumf %111, %112 : vector<16x32xf32>
      %c0_74 = arith.constant 0 : index
      %c0_75 = arith.constant 0 : index
      %114 = vector.load %arg23[%c0_74, %c0_75] : memref<16x32xf32, #tpu.memory_space<vmem>>, vector<16x32xf32>
      tpu.vector_store %arg23[%c0_74, %c0_75], %113 {strides = array<i32>} : memref<16x32xf32, #tpu.memory_space<vmem>>, vector<16x32xf32>,
    } else {
    }
    %c0 = arith.constant 0 : index
    %c0_1 = arith.constant 0 : index
    %3 = vector.load %arg23[%c0, %c0_1] : memref<16x32xf32, #tpu.memory_space<vmem>>, vector<16x32xf32>
    %c0_2 = arith.constant 0 : index
    %c0_3 = arith.constant 0 : index
    %4 = vector.load %arg4[%c0_2, %c0_3] : memref<32x16xf32, #tpu.memory_space<vmem>>, vector<32x16xf32>
    %cst = arith.constant dense<0.000000e+00> : vector<32x32xf32>
    %5 = tpu.matmul %4, %3, %cst {dimension_numbers = #tpu.dot_dimension_numbers<[1], [0], [0], [1], [0, 0, 1, 1], [], []>} : vector<32x16xf32>, vector<16x32xf32>, vector<32x32xf32> -> vector<32x32xf32>
    %c0_4 = arith.constant 0 : index
    %c0_5 = arith.constant 0 : index
    %6 = vector.load %arg12[%c0_4, %c0_5] : memref<32x32xf32, #tpu.memory_space<vmem>>, vector<32x32xf32>
    %cst_6 = arith.constant dense<0.000000e+00> : vector<32x32xf32>
    %7 = tpu.matmul %5, %6, %cst_6 {dimension_numbers = #tpu.dot_dimension_numbers<[1], [0], [0], [1], [0, 0, 1, 1], [], []>} : vector<32x32xf32>, vector<32x32xf32>, vector<32x32xf32> -> vector<32x32xf32>
    %c0_7 = arith.constant 0 : index
    %c0_8 = arith.constant 0 : index
    %8 = vector.load %arg22[%c0_7, %c0_8] : memref<32x8xf32, #tpu.memory_space<vmem>>, vector<32x8xf32>
    %c0_9 = arith.constant 0 : index
    %c0_10 = arith.constant 0 : index
    %9 = vector.load %arg13[%c0_9, %c0_10] : memref<8x32xf32, #tpu.memory_space<vmem>>, vector<8x32xf32>
    %cst_11 = arith.constant dense<0.000000e+00> : vector<32x32xf32>
    %10 = tpu.matmul %8, %9, %cst_11 {dimension_numbers = #tpu.dot_dimension_numbers<[1], [0], [0], [1], [0, 0, 1, 1], [], []>} : vector<32x8xf32>, vector<8x32xf32>, vector<32x32xf32> -> vector<32x32xf32>
    %11 = arith.addf %7, %10 : vector<32x32xf32>
    %c0_12 = arith.constant 0 : index
    %c0_13 = arith.constant 0 : index
    %12 = vector.load %arg15[%c0_12, %c0_13] : memref<2x32xf32, #tpu.memory_space<vmem>>, vector<1x32xf32>
    %13 = vector.broadcast %12 : vector<1x32xf32> to vector<32x32xf32>
    %14 = arith.addf %11, %13 : vector<32x32xf32>
    %cst_14 = arith.constant 0.000000e+00 : f32
    %15 = vector.broadcast %cst_14 : f32 to vector<32x32xf32>
    %16 = arith.maximumf %14, %15 : vector<32x32xf32>
    %c0_15 = arith.constant 0 : index
    %c0_16 = arith.constant 0 : index
    %17 = vector.load %arg5[%c0_15, %c0_16] : memref<16x32xf32, #tpu.memory_space<vmem>>, vector<16x32xf32>
    %cst_17 = arith.constant dense<0.000000e+00> : vector<16x32xf32>
    %18 = tpu.matmul %17, %16, %cst_17 {dimension_numbers = #tpu.dot_dimension_numbers<[1], [0], [0], [1], [0, 0, 1, 1], [], []>} : vector<16x32xf32>, vector<32x32xf32>, vector<16x32xf32> -> vector<16x32xf32>
    %c0_18 = arith.constant 0 : index
    %c0_19 = arith.constant 0 : index
    %19 = vector.load %arg14[%c0_18, %c0_19] : memref<32x32xf32, #tpu.memory_space<vmem>>, vector<32x32xf32>
    %cst_20 = arith.constant dense<0.000000e+00> : vector<16x32xf32>
    %20 = tpu.matmul %18, %19, %cst_20 {dimension_numbers = #tpu.dot_dimension_numbers<[1], [0], [0], [1], [0, 0, 1, 1], [], []>} : vector<16x32xf32>, vector<32x32xf32>, vector<16x32xf32> -> vector<16x32xf32>
    %c1 = arith.constant 1 : index
    %c0_21 = arith.constant 0 : index
    %21 = vector.load %arg15[%c1, %c0_21] : memref<2x32xf32, #tpu.memory_space<vmem>>, vector<1x32xf32>
    %22 = vector.broadcast %21 : vector<1x32xf32> to vector<16x32xf32>
    %23 = arith.addf %20, %22 : vector<16x32xf32>
    %cst_22 = arith.constant 0.000000e+00 : f32
    %24 = vector.broadcast %cst_22 : f32 to vector<16x32xf32>
    %25 = arith.maximumf %23, %24 : vector<16x32xf32>
    %c0_23 = arith.constant 0 : index
    %c0_24 = arith.constant 0 : index
    %26 = vector.load %arg16[%c0_23, %c0_24] : memref<32x96xf32, #tpu.memory_space<vmem>>, vector<32x96xf32>
    %cst_25 = arith.constant dense<0.000000e+00> : vector<16x96xf32>
    %27 = tpu.matmul %25, %26, %cst_25 {dimension_numbers = #tpu.dot_dimension_numbers<[1], [0], [0], [1], [0, 0, 1, 1], [], []>} : vector<16x32xf32>, vector<32x96xf32>, vector<16x96xf32> -> vector<16x96xf32>
    %c0_26 = arith.constant 0 : index
    %c0_27 = arith.constant 0 : index
    %28 = vector.load %arg18[%c0_26, %c0_27] : memref<2x96xf32, #tpu.memory_space<vmem>>, vector<1x96xf32>
    %29 = vector.broadcast %28 : vector<1x96xf32> to vector<16x96xf32>
    %30 = arith.addf %27, %29 : vector<16x96xf32>
    %c0_28 = arith.constant 0 : index
    %c0_29 = arith.constant 0 : index
    %31 = vector.load %arg17[%c0_28, %c0_29] : memref<32x96xf32, #tpu.memory_space<vmem>>, vector<32x96xf32>
    %cst_30 = arith.constant dense<0.000000e+00> : vector<16x96xf32>
    %32 = tpu.matmul %3, %31, %cst_30 {dimension_numbers = #tpu.dot_dimension_numbers<[1], [0], [0], [1], [0, 0, 1, 1], [], []>} : vector<16x32xf32>, vector<32x96xf32>, vector<16x96xf32> -> vector<16x96xf32>
    %c1_31 = arith.constant 1 : index
    %c0_32 = arith.constant 0 : index
    %33 = vector.load %arg18[%c1_31, %c0_32] : memref<2x96xf32, #tpu.memory_space<vmem>>, vector<1x96xf32>
    %34 = vector.broadcast %33 : vector<1x96xf32> to vector<16x96xf32>
    %35 = arith.addf %32, %34 : vector<16x96xf32>
    %36 = vector.extract_strided_slice %30 {offsets = [0, 0], sizes = [16, 32], strides = [1, 1]} : vector<16x96xf32> to vector<16x32xf32>
    %37 = vector.extract_strided_slice %35 {offsets = [0, 0], sizes = [16, 32], strides = [1, 1]} : vector<16x96xf32> to vector<16x32xf32>
    %38 = arith.addf %36, %37 : vector<16x32xf32>
    %39 = arith.negf %38 : vector<16x32xf32>
    %40 = math.exp %39 : vector<16x32xf32>
    %cst_33 = arith.constant 1.000000e+00 : f32
    %41 = vector.broadcast %cst_33 : f32 to vector<16x32xf32>
    %42 = arith.addf %41, %40 : vector<16x32xf32>
    %43 = arith.divf %41, %42 : vector<16x32xf32>
    %44 = vector.extract_strided_slice %30 {offsets = [0, 32], sizes = [16, 32], strides = [1, 1]} : vector<16x96xf32> to vector<16x32xf32>
    %45 = vector.extract_strided_slice %35 {offsets = [0, 32], sizes = [16, 32], strides = [1, 1]} : vector<16x96xf32> to vector<16x32xf32>
    %46 = arith.addf %44, %45 : vector<16x32xf32>
    %47 = arith.negf %46 : vector<16x32xf32>
    %48 = math.exp %47 : vector<16x32xf32>
    %cst_34 = arith.constant 1.000000e+00 : f32
    %49 = vector.broadcast %cst_34 : f32 to vector<16x32xf32>
    %50 = arith.addf %49, %48 : vector<16x32xf32>
    %51 = arith.divf %49, %50 : vector<16x32xf32>
    %52 = vector.extract_strided_slice %30 {offsets = [0, 64], sizes = [16, 32], strides = [1, 1]} : vector<16x96xf32> to vector<16x32xf32>
    %53 = vector.extract_strided_slice %35 {offsets = [0, 64], sizes = [16, 32], strides = [1, 1]} : vector<16x96xf32> to vector<16x32xf32>
    %54 = arith.mulf %43, %53 : vector<16x32xf32>
    %55 = arith.addf %52, %54 : vector<16x32xf32>
    %56 = math.tanh %55 : vector<16x32xf32>
    %cst_35 = arith.constant 1.000000e+00 : f32
    %57 = vector.broadcast %cst_35 : f32 to vector<16x32xf32>
    %58 = arith.subf %57, %51 : vector<16x32xf32>
    %59 = arith.mulf %58, %56 : vector<16x32xf32>
    %60 = arith.mulf %51, %3 : vector<16x32xf32>
    %61 = arith.addf %59, %60 : vector<16x32xf32>
    %c0_36 = arith.constant 0 : index
    %c0_37 = arith.constant 0 : index
    %62 = vector.load %arg23[%c0_36, %c0_37] : memref<16x32xf32, #tpu.memory_space<vmem>>, vector<16x32xf32>
    tpu.vector_store %arg23[%c0_36, %c0_37], %61 {strides = array<i32>} : memref<16x32xf32, #tpu.memory_space<vmem>>, vector<16x32xf32>,
    %c0_38 = arith.constant 0 : index
    %c0_39 = arith.constant 0 : index
    %63 = vector.load %arg19[%c0_38, %c0_39] : memref<32x128xf32, #tpu.memory_space<vmem>>, vector<32x128xf32>
    %cst_40 = arith.constant dense<0.000000e+00> : vector<16x128xf32>
    %64 = tpu.matmul %61, %63, %cst_40 {dimension_numbers = #tpu.dot_dimension_numbers<[1], [0], [0], [1], [0, 0, 1, 1], [], []>} : vector<16x32xf32>, vector<32x128xf32>, vector<16x128xf32> -> vector<16x128xf32>
    %c0_41 = arith.constant 0 : index
    %c0_42 = arith.constant 0 : index
    %65 = vector.load %arg20[%c0_41, %c0_42] : memref<1x128xf32, #tpu.memory_space<vmem>>, vector<1x128xf32>
    %66 = vector.broadcast %65 : vector<1x128xf32> to vector<16x128xf32>
    %67 = arith.addf %64, %66 : vector<16x128xf32>
    %cst_43 = arith.constant dense<0xFF800000> : vector<16xf32>
    %68 = vector.multi_reduction <maximumf>, %67, %cst_43 [1] : vector<16x128xf32> to vector<16xf32>
    %69 = vector.shape_cast %68 : vector<16xf32> to vector<16x1xf32>
    %70 = vector.broadcast %69 : vector<16x1xf32> to vector<16x128xf32>
    %71 = arith.subf %67, %70 : vector<16x128xf32>
    %72 = math.exp %71 : vector<16x128xf32>
    %cst_44 = arith.constant dense<0.000000e+00> : vector<16xf32>
    %73 = vector.multi_reduction <add>, %72, %cst_44 [1] : vector<16x128xf32> to vector<16xf32>
    %74 = vector.shape_cast %73 : vector<16xf32> to vector<16x1xf32>
    %75 = math.log %74 : vector<16x1xf32>
    %76 = vector.broadcast %75 : vector<16x1xf32> to vector<16x128xf32>
    %77 = arith.subf %71, %76 : vector<16x128xf32>
    %78 = vector.shape_cast %77 : vector<16x128xf32> to vector<1x16x128xf32>
    %c0_45 = arith.constant 0 : index
    %c0_46 = arith.constant 0 : index
    %c0_47 = arith.constant 0 : index
    %79 = vector.load %arg21[%c0_45, %c0_46, %c0_47] : memref<1x16x128xf32, #tpu.memory_space<vmem>>, vector<1x16x128xf32>
    tpu.vector_store %arg21[%c0_45, %c0_46, %c0_47], %78 {strides = array<i32>} : memref<1x16x128xf32, #tpu.memory_space<vmem>>, vector<1x16x128xf32>,
    return
  }
  func.func @transform_0(%arg0: i32) -> (i32, i32) {
    %c0_i32 = arith.constant 0 : i32
    %c0_i32_0 = arith.constant 0 : i32
    %c0_i32_1 = arith.constant 0 : i32
    return %c0_i32, %c0_i32_0 : i32, i32
  }
  func.func @transform_1(%arg0: i32) -> (i32, i32) {
    %c0_i32 = arith.constant 0 : i32
    %c0_i32_0 = arith.constant 0 : i32
    %c0_i32_1 = arith.constant 0 : i32
    return %c0_i32, %c0_i32_0 : i32, i32
  }
  func.func @transform_2(%arg0: i32) -> (i32, i32) {
    %c0_i32 = arith.constant 0 : i32
    %c0_i32_0 = arith.constant 0 : i32
    %c0_i32_1 = arith.constant 0 : i32
    return %c0_i32, %c0_i32_0 : i32, i32
  }
  func.func @transform_3(%arg0: i32) -> (i32, i32) {
    %c0_i32 = arith.constant 0 : i32
    %c0_i32_0 = arith.constant 0 : i32
    %c0_i32_1 = arith.constant 0 : i32
    return %c0_i32, %c0_i32_0 : i32, i32
  }
  func.func @transform_4(%arg0: i32) -> (i32, i32) {
    %c0_i32 = arith.constant 0 : i32
    %c0_i32_0 = arith.constant 0 : i32
    %c0_i32_1 = arith.constant 0 : i32
    return %c0_i32, %c0_i32_0 : i32, i32
  }
  func.func @transform_5(%arg0: i32) -> (i32, i32) {
    %c0_i32 = arith.constant 0 : i32
    %c0_i32_0 = arith.constant 0 : i32
    %c0_i32_1 = arith.constant 0 : i32
    return %c0_i32, %c0_i32_0 : i32, i32
  }
  func.func @transform_6(%arg0: i32) -> (i32, i32) {
    %c0_i32 = arith.constant 0 : i32
    %c0_i32_0 = arith.constant 0 : i32
    %c0_i32_1 = arith.constant 0 : i32
    return %c0_i32, %c0_i32_0 : i32, i32
  }
  func.func @transform_7(%arg0: i32) -> (i32, i32) {
    %c0_i32 = arith.constant 0 : i32
    %c0_i32_0 = arith.constant 0 : i32
    %c0_i32_1 = arith.constant 0 : i32
    return %c0_i32, %c0_i32_0 : i32, i32
  }
  func.func @transform_8(%arg0: i32) -> (i32, i32) {
    %c0_i32 = arith.constant 0 : i32
    %c0_i32_0 = arith.constant 0 : i32
    %c0_i32_1 = arith.constant 0 : i32
    return %c0_i32, %c0_i32_0 : i32, i32
  }
  func.func @transform_9(%arg0: i32) -> (i32, i32) {
    %c0_i32 = arith.constant 0 : i32
    %c0_i32_0 = arith.constant 0 : i32
    %c0_i32_1 = arith.constant 0 : i32
    return %c0_i32, %c0_i32_0 : i32, i32
  }
  func.func @transform_10(%arg0: i32) -> (i32, i32) {
    %c0_i32 = arith.constant 0 : i32
    %c0_i32_0 = arith.constant 0 : i32
    %c0_i32_1 = arith.constant 0 : i32
    return %c0_i32, %c0_i32_0 : i32, i32
  }
  func.func @transform_11(%arg0: i32) -> (i32, i32) {
    %c0_i32 = arith.constant 0 : i32
    %c0_i32_0 = arith.constant 0 : i32
    %c0_i32_1 = arith.constant 0 : i32
    return %c0_i32, %c0_i32_0 : i32, i32
  }
  func.func @transform_12(%arg0: i32) -> (i32, i32) {
    %c0_i32 = arith.constant 0 : i32
    %c0_i32_0 = arith.constant 0 : i32
    %c0_i32_1 = arith.constant 0 : i32
    return %c0_i32, %c0_i32_0 : i32, i32
  }
  func.func @transform_13(%arg0: i32) -> (i32, i32) {
    %c0_i32 = arith.constant 0 : i32
    %c0_i32_0 = arith.constant 0 : i32
    %c0_i32_1 = arith.constant 0 : i32
    return %c0_i32, %c0_i32_0 : i32, i32
  }
  func.func @transform_14(%arg0: i32) -> (i32, i32) {
    %c0_i32 = arith.constant 0 : i32
    %c0_i32_0 = arith.constant 0 : i32
    %c0_i32_1 = arith.constant 0 : i32
    return %c0_i32, %c0_i32_0 : i32, i32
  }
  func.func @transform_15(%arg0: i32) -> (i32, i32) {
    %c0_i32 = arith.constant 0 : i32
    %c0_i32_0 = arith.constant 0 : i32
    %c0_i32_1 = arith.constant 0 : i32
    return %c0_i32, %c0_i32_0 : i32, i32
  }
  func.func @transform_16(%arg0: i32) -> (i32, i32) {
    %c0_i32 = arith.constant 0 : i32
    %c0_i32_0 = arith.constant 0 : i32
    %c0_i32_1 = arith.constant 0 : i32
    return %c0_i32, %c0_i32_0 : i32, i32
  }
  func.func @transform_17(%arg0: i32) -> (i32, i32) {
    %c0_i32 = arith.constant 0 : i32
    %c0_i32_0 = arith.constant 0 : i32
    %c0_i32_1 = arith.constant 0 : i32
    return %c0_i32, %c0_i32_0 : i32, i32
  }
  func.func @transform_18(%arg0: i32) -> (i32, i32) {
    %c0_i32 = arith.constant 0 : i32
    %c0_i32_0 = arith.constant 0 : i32
    %c0_i32_1 = arith.constant 0 : i32
    return %c0_i32, %c0_i32_0 : i32, i32
  }
  func.func @transform_19(%arg0: i32) -> (i32, i32) {
    %c0_i32 = arith.constant 0 : i32
    %c0_i32_0 = arith.constant 0 : i32
    %c0_i32_1 = arith.constant 0 : i32
    return %c0_i32, %c0_i32_0 : i32, i32
  }
  func.func @transform_20(%arg0: i32) -> (i32, i32, i32) {
    %c0_i32 = arith.constant 0 : i32
    %c0_i32_0 = arith.constant 0 : i32
    %c0_i32_1 = arith.constant 0 : i32
    return %arg0, %c0_i32, %c0_i32_0 : i32, i32, i32
  }
}

</mosaic_0001>

<bundles_post_ra>
// kernel: _device_forward.1
= control target key start
LH: loop header
LB: loop body
LE: loop exit
PB: predicated region body
PF: predicated region fallthrough
CT: control target
= control target key end

     0   :  { %s3283_s0 = inlined_call_operand.vmem [shape: f32[16,1], index: 0, kind: input, shape index: {}]   ;;  %s3284_s1 = inlined_call_operand.vmem [shape: f32[16,1], index: 1, kind: input, shape index: {}]   ;;  %s3285_s2 = inlined_call_operand.vmem [shape: f32[32,1], index: 2, kind: input, shape index: {}]   ;;  %s3286_s3 = inlined_call_operand.vmem [shape: f32[32,16], index: 3, kind: input, shape index: {}]   ;;  %s3287_s4 = inlined_call_operand.hbm [shape: f32[16,32], index: 4, kind: input, shape index: {}]   ;;  %s3288_s5 = inlined_call_operand.hbm [shape: f32[2,16], index: 5, kind: input, shape index: {}]   ;;  %s3289_s6 = inlined_call_operand.hbm [shape: f32[1,16], index: 6, kind: input, shape index: {}]   ;;  %s3290_s7 = inlined_call_operand.hbm [shape: f32[1,8], index: 7, kind: input, shape index: {}]   ;;  %s3291_s8 = inlined_call_operand.hbm [shape: f32[1,8], index: 8, kind: input, shape index: {}]   ;;  %s3292_s9 = inlined_call_operand.hbm [shape: f32[16,32], index: 9, kind: input, shape index: {}]   ;;  %s3293_s10 = inlined_call_operand.hbm [shape: f32[1,32], index: 10, kind: input, shape index: {}]   ;;  %s3294_s11 = inlined_call_operand.vmem [shape: f32[32,32], index: 11, kind: input, shape index: {}]   ;;  %s3295_s12 = inlined_call_operand.hbm [shape: f32[8,32], index: 12, kind: input, shape index: {}]   ;;  %s3296_s13 = inlined_call_operand.vmem [shape: f32[32,32], index: 13, kind: input, shape index: {}]   ;;  %s3297_s14 = inlined_call_operand.hbm [shape: f32[2,32], index: 14, kind: input, shape index: {}]   ;;  %s3298_s15 = inlined_call_operand.vmem [shape: f32[32,96], index: 15, kind: input, shape index: {}]   ;;  %s3299_s16 = inlined_call_operand.vmem [shape: f32[32,96], index: 16, kind: input, shape index: {}]   ;;  %s3300_s17 = inlined_call_operand.hbm [shape: f32[2,96], index: 17, kind: input, shape index: {}]   ;;  %s3301_s18 = inlined_call_operand.vmem [shape: f32[32,128], index: 18, kind: input, shape index: {}]   ;;  %s3302_s19 = inlined_call_operand.hbm [shape: f32[1,128], index: 19, kind: input, shape index: {}]   ;;  %s3303_s20 = inlined_call_operand.vmem [shape: f32[3,16,128], index: 20, kind: output, shape index: {}]  }
   0x1   :  { %3316 = sst [smem:[#allocation28_spill]] %s3283_s0 }
   0x2   :  { %3317 = sst [smem:[#allocation29_spill]] %s3284_s1 }
   0x3   :  { %3318 = sst [smem:[#allocation30_spill]] %s3285_s2 }
   0x4   :  { %3319 = sst [smem:[#allocation31_spill]] %s3286_s3 }
   0x5   :  { %3320 = sst [smem:[#allocation32_spill]] %s3287_s4 }
   0x6   :  { %3321 = sst [smem:[#allocation33_spill]] %s3288_s5 }
   0x7   :  { %3322 = sst [smem:[#allocation34_spill]] %s3290_s7 }
   0x8   :  { %3323 = sst [smem:[#allocation35_spill]] %s3292_s9 }
   0x9   :  { %3324 = sst [smem:[#allocation36_spill]] %s3298_s15 }
   0xa   :  { %3325 = sst [smem:[#allocation37_spill]] %s3301_s18 }
   0xb   :  { %25 = vsyncpa [#allocation5], 0 }
   0xc   :  { %26 = vsyncpa [#allocation7], 0 }
   0xd   :  { %27 = vsyncpa [#allocation10], 0 }
   0xe   :  { %28 = vsyncpa [#allocation13], 0 }
   0xf   :  { %29 = vsyncpa [#allocation16], 0 }
  0x10   :  { %30 = vsyncpa [#allocation19], 0  ;;  %s2850_s1 = smov 0  }
  0x11 LB: > { %3326 = sst [smem:[#allocation27_spill]] %s2726_s1  ;;  %s2728_s22 = smov [#allocation6]   ;;  %s2726_s1 = sphi %s2850_s1, %s36_s1  }
  0x12   : > { %s525_s23 = sshll.u32 %s2728_s22, 4  ;;  %s2856_s24 = sadd.s32 4294967295, %s2726_s1   ;;  %s2862_s23 = int_to_ptr.vmem [resolvable:$true] %s525_s23 }
  0x13   : > { %p1967_p0 = scmp.ge.s32.totalorder %s2726_s1, 1  ;;  %p487_p1 = scmp.lt.s32.totalorder %s2726_s1, 4 }
  0x14   : > { %p3312_p3 = scmp.eq.s32.totalorder %s2856_s24, 0  ;;  %s2729_s25 = smov [#allocation9]  }
  0x15   : > { %p2864_p4 = pnand %p1967_p0, %p487_p1  ;;  %s547_s3 = sshll.u32 %s2729_s25, 4  ;;  %s2870_s3 = int_to_ptr.vmem [resolvable:$true] %s547_s3 }
  0x16   : > { %s2730_s27 = smov [#allocation12]   ;;  %s2731_s4 = smov [#allocation15]  }
  0x17   : > { %s3327_s2 = scalar_select %p2864_p4, 1, 0 }
  0x18   : > { %p2285_p5 = pneg %p2864_p4  ;;  %s568_s28 = sshll.u32 %s2730_s27, 4  ;;  %s2878_s28 = int_to_ptr.vmem [resolvable:$true] %s568_s28 }
  0x19   : > { %s2880_s29 = sshll.u32 %s2731_s4, 4  ;;  %s3329_s5 = sld [smem:[#allocation33_spill]]  ;;  %s597_s29 = int_to_ptr.vmem [resolvable:$true] %s2880_s29 }
  0x1a   : > { %p2874_p6 = pnand %p3312_p3, %p2285_p5 }
  0x1c   : > { %p2890_p8 = pneg %p2874_p6 }
  0x1f   : > { %s2388_s21 = scalar_lea.hbm %s3329_s5, 32 }
  0x20   : > { %p2389_p7 = scmp.ne.s32.totalorder %s3329_s5, %s2388_s21  ;;  %p2395_p11 = scmp.lt.u32.totalorder %s2388_s21, %s3329_s5 }
  0x22   : > { %p2391_p9 = pnand %p2890_p8, %p2389_p7 }
  0x24   : > { %p2392_p10 = pneg %p2391_p9 }
  0x26   : > { %p2397_p12 = pnand %p2395_p11, %p2392_p10 }
  0x28   : > { %2400 = shalt.err (!%p2397_p12)
}
  0x29   : > { %s2401_s30 = scalar_lea.vmem %s2862_s23, 32  ;;  %p2409_p5 = scmp.lt.s32.totalorder %s2862_s23, %s2862_s23 }
  0x2a   : > { %p2402_p13 = scmp.ne.s32.totalorder %s2862_s23, %s2401_s30  ;;  %p2410_p2 = scmp.lt.s32.totalorder %s2401_s30, %s2401_s30 }
  0x2c   : > { %p2404_p0 = pnand %p2402_p13, %p2890_p8  ;;  %p2411_p7 = por %p2410_p2, %p2409_p5 }
  0x2e   : > { %p2405_p1 = pneg %p2404_p0 }
  0x30   : > { %p2412_p9 = pnand %p2411_p7, %p2405_p1 }
  0x32   : > { %2415 = shalt.err (!%p2412_p9)
}
  0x33   : > { %2291 = dma.hbm_to_vmem [thread:$0]  (!%p2874_p6), %s3329_s5, 32, %s2862_s23, [#allocation7]  }
  0x34   : > { %s3331_s7 = sld [smem:[#allocation34_spill]] }
  0x3a   : > { %s2416_s27 = scalar_lea.hbm %s3331_s7, 16 }
  0x3b   : > { %p2417_p10 = scmp.ne.s32.totalorder %s3331_s7, %s2416_s27  ;;  %p2423_p12 = scmp.lt.u32.totalorder %s2416_s27, %s3331_s7 }
  0x3d   : > { %p2419_p2 = pnand %p2417_p10, %p2890_p8 }
  0x3f   : > { %p2420_p11 = pneg %p2419_p2 }
  0x41   : > { %p2425_p13 = pnand %p2423_p12, %p2420_p11 }
  0x43   : > { %2428 = shalt.err (!%p2425_p13)
}
  0x44   : > { %s2429_s23 = scalar_lea.vmem %s2870_s3, 16  ;;  %s2436_s18 = scalar_lea.vmem %s2870_s3, 32 }
  0x45   : > { %p2430_p0 = scmp.ne.s32.totalorder %s2870_s3, %s2429_s23  ;;  %p2437_p7 = scmp.lt.s32.totalorder %s2870_s3, %s2870_s3 }
  0x46   : > { %p2438_p9 = scmp.lt.s32.totalorder %s2436_s18, %s2429_s23 }
  0x47   : > { %p2432_p1 = pnand %p2430_p0, %p2890_p8 }
  0x48   : > { %p2439_p10 = por %p2438_p9, %p2437_p7 }
  0x49   : > { %p2433_p5 = pneg %p2432_p1 }
  0x4b   : > { %p2440_p2 = pnand %p2439_p10, %p2433_p5 }
  0x4d   : > { %2443 = shalt.err (!%p2440_p2)
}
  0x4e   : > { %2297 = dma.hbm_to_vmem [thread:$0]  (!%p2874_p6), %s3331_s7, 16, %s2870_s3, [#allocation10]  }
  0x4f   : > { %s3332_s9 = sld [smem:[#allocation35_spill]] }
  0x55   : > { %s2444_s25 = scalar_lea.hbm %s3332_s9, 256 }
  0x56   : > { %p2445_p11 = scmp.ne.s32.totalorder %s3332_s9, %s2444_s25  ;;  %p2451_p0 = scmp.lt.u32.totalorder %s2444_s25, %s3332_s9 }
  0x58   : > { %p2447_p12 = pnand %p2445_p11, %p2890_p8 }
  0x5a   : > { %p2448_p13 = pneg %p2447_p12 }
  0x5c   : > { %p2453_p1 = pnand %p2451_p0, %p2448_p13 }
  0x5e   : > { %2456 = shalt.err (!%p2453_p1)
}
  0x5f   : > { %s2457_s3 = scalar_lea.vmem %s2878_s28, 256  ;;  %p2465_p10 = scmp.lt.s32.totalorder %s2878_s28, %s2878_s28 }
  0x60   : > { %p2458_p5 = scmp.ne.s32.totalorder %s2878_s28, %s2457_s3  ;;  %p2466_p2 = scmp.lt.s32.totalorder %s2457_s3, %s2457_s3 }
  0x62   : > { %p2460_p7 = pnand %p2458_p5, %p2890_p8  ;;  %p2467_p11 = por %p2466_p2, %p2465_p10 }
  0x64   : > { %p2461_p9 = pneg %p2460_p7 }
  0x66   : > { %p2468_p12 = pnand %p2467_p11, %p2461_p9 }
  0x68   : > { %2471 = shalt.err (!%p2468_p12)
}
  0x69   : > { %s3314_s18 = smov 128   ;;  %s3315_s15 = smov 8  }
  0x6a   : > { %2303 = dma.hbm_to_vmem [thread:$0]  (!%p2874_p6), %s3332_s9, 256, %s2878_s28, [#allocation13], %s3314_s18, %s3314_s18, %s3315_s15  }
  0x6b   : > { %s2472_s27 = scalar_lea.hbm %s3295_s12, 128 }
  0x6c   : > { %p2473_p13 = scmp.ne.s32.totalorder %s3295_s12, %s2472_s27  ;;  %p2479_p5 = scmp.lt.u32.totalorder %s2472_s27, %s3295_s12 }
  0x6e   : > { %p2475_p0 = pnand %p2473_p13, %p2890_p8 }
  0x70   : > { %p2476_p1 = pneg %p2475_p0 }
  0x72   : > { %p2481_p7 = pnand %p2479_p5, %p2476_p1 }
  0x74   : > { %2484 = shalt.err (!%p2481_p7)
}
  0x75   : > { %s2485_s0 = scalar_lea.vmem %s597_s29, 128  ;;  %p2493_p11 = scmp.lt.s32.totalorder %s597_s29, %s597_s29 }
  0x76   : > { %p2486_p9 = scmp.ne.s32.totalorder %s597_s29, %s2485_s0  ;;  %p2494_p12 = scmp.lt.s32.totalorder %s2485_s0, %s2485_s0 }
  0x78   : > { %p2488_p10 = pnand %p2486_p9, %p2890_p8  ;;  %p2495_p3 = por %p2494_p12, %p2493_p11 }
  0x7a   : > { %p2489_p2 = pneg %p2488_p10 }
  0x7c   : > { %p2496_p4 = pnand %p2495_p3, %p2489_p2 }
  0x7e   : > { %2499 = shalt.err (!%p2496_p4)
}
  0x7f   : > { %2309 = dma.hbm_to_vmem [thread:$0]  (!%p2874_p6), %s3295_s12, 128, %s597_s29, [#allocation16]  }
  0x80   : > { %s2734_s22 = smov [#allocation18]   ;;  %s2735_s27 = smov [#allocation4]  }
  0x81   : > { %s627_s25 = sshll.u32 %s2734_s22, 4  ;;  %s511_s4 = sshll.u32 %s2735_s27, 4  ;;  %s628_s25 = int_to_ptr.vmem [resolvable:$true] %s627_s25  ;;  %s512_s4 = int_to_ptr.vmem [resolvable:$true] %s511_s4 }
  0x82   : > { %s2500_s3 = scalar_lea.hbm %s3300_s17, 32 }
  0x83   : > { %p2501_p3 = scmp.ne.s32.totalorder %s3300_s17, %s2500_s3  ;;  %p2507_p0 = scmp.lt.u32.totalorder %s2500_s3, %s3300_s17 }
  0x85   : > { %p2503_p4 = pnand %p2501_p3, %p2890_p8 }
  0x87   : > { %p2504_p13 = pneg %p2503_p4 }
  0x89   : > { %p2509_p1 = pnand %p2507_p0, %p2504_p13 }
  0x8b   : > { %2512 = shalt.err (!%p2509_p1)
}
  0x8c   : > { %s2513_s29 = scalar_lea.vmem %s628_s25, 32  ;;  %p2521_p10 = scmp.lt.s32.totalorder %s628_s25, %s628_s25 }
  0x8d   : > { %p2514_p5 = scmp.ne.s32.totalorder %s628_s25, %s2513_s29  ;;  %p2522_p2 = scmp.lt.s32.totalorder %s2513_s29, %s2513_s29 }
  0x8f   : > { %p2516_p7 = pnand %p2514_p5, %p2890_p8  ;;  %p2523_p11 = por %p2522_p2, %p2521_p10 }
  0x91   : > { %p2517_p9 = pneg %p2516_p7 }
  0x93   : > { %p2524_p12 = pnand %p2523_p11, %p2517_p9 }
  0x95   : > { %2527 = shalt.err (!%p2524_p12)
}
  0x96   : > { %2315 = dma.hbm_to_vmem [thread:$0]  (!%p2874_p6), %s3300_s17, 32, %s628_s25, [#allocation19]  }
  0x97   : > { %s3333_s27 = sld [smem:[#allocation32_spill]] }
  0x9d   : > { %s2528_s30 = scalar_lea.hbm %s3333_s27, 256 }
  0x9e   : > { %p2529_p3 = scmp.ne.s32.totalorder %s3333_s27, %s2528_s30  ;;  %p2535_p0 = scmp.lt.u32.totalorder %s2528_s30, %s3333_s27 }
  0xa0   : > { %p2531_p4 = pnand %p2529_p3, %p2890_p8 }
  0xa2   : > { %p2532_p13 = pneg %p2531_p4 }
  0xa4   : > { %p2537_p1 = pnand %p2535_p0, %p2532_p13 }
  0xa6   : > { %2540 = shalt.err (!%p2537_p1)
}
  0xa7   : > { %s2541_s29 = scalar_lea.vmem %s512_s4, 256  ;;  %p2549_p10 = scmp.lt.s32.totalorder %s512_s4, %s512_s4 }
  0xa8   : > { %p2542_p5 = scmp.ne.s32.totalorder %s512_s4, %s2541_s29  ;;  %p2550_p2 = scmp.lt.s32.totalorder %s2541_s29, %s2541_s29 }
  0xaa   : > { %p2544_p7 = pnand %p2542_p5, %p2890_p8  ;;  %p2551_p11 = por %p2550_p2, %p2549_p10 }
  0xac   : > { %p2545_p9 = pneg %p2544_p7 }
  0xae   : > { %p2552_p12 = pnand %p2551_p11, %p2545_p9 }
  0xb0   : > { %2555 = shalt.err (!%p2552_p12)
}
  0xb1   : > { %s3334_s25 = smov 8   ;;  %s3335_s18 = smov 128  }
  0xb2   : > { %2288 = dma.hbm_to_vmem [thread:$0]  (!%p2874_p6), %s3333_s27, 256, %s512_s4, [#allocation5], %s3335_s18, %s3335_s18, %s3334_s25  }
  0xb3   : > { %s2736_s22 = smov [#allocation8]   ;;  %s2737_s23 = smov [#allocation11]  }
  0xb4   : > { %s536_s30 = sshll.u32 %s2736_s22, 4  ;;  %s558_s3 = sshll.u32 %s2737_s23, 4  ;;  %s537_s30 = int_to_ptr.vmem [resolvable:$true] %s536_s30  ;;  %s559_s3 = int_to_ptr.vmem [resolvable:$true] %s558_s3 }
  0xb5   : > { %s2556_s29 = scalar_lea.hbm %s3289_s6, 16 }
  0xb6   : > { %p2557_p3 = scmp.ne.s32.totalorder %s3289_s6, %s2556_s29  ;;  %p2563_p0 = scmp.lt.u32.totalorder %s2556_s29, %s3289_s6 }
  0xb8   : > { %p2559_p4 = pnand %p2557_p3, %p2890_p8 }
  0xba   : > { %p2560_p13 = pneg %p2559_p4 }
  0xbc   : > { %p2565_p1 = pnand %p2563_p0, %p2560_p13 }
  0xbe   : > { %2568 = shalt.err (!%p2565_p1)
}
  0xbf   : > { %s2569_s4 = scalar_lea.vmem %s537_s30, 16  ;;  %s2576_s25 = scalar_lea.vmem %s537_s30, 32 }
  0xc0   : > { %p2570_p5 = scmp.ne.s32.totalorder %s537_s30, %s2569_s4  ;;  %p2577_p10 = scmp.lt.s32.totalorder %s537_s30, %s537_s30 }
  0xc1   : > { %p2578_p2 = scmp.lt.s32.totalorder %s2576_s25, %s2569_s4 }
  0xc2   : > { %p2572_p7 = pnand %p2570_p5, %p2890_p8 }
  0xc3   : > { %p2579_p11 = por %p2578_p2, %p2577_p10 }
  0xc4   : > { %p2573_p9 = pneg %p2572_p7 }
  0xc6   : > { %p2580_p12 = pnand %p2579_p11, %p2573_p9 }
  0xc8   : > { %2583 = shalt.err (!%p2580_p12)
}
  0xc9   : > { %2294 = dma.hbm_to_vmem [thread:$0]  (!%p2874_p6), %s3289_s6, 16, %s537_s30, [#allocation7]  }
  0xca   : > { %s2584_s15 = scalar_lea.hbm %s3291_s8, 16 }
  0xcb   : > { %p2585_p3 = scmp.ne.s32.totalorder %s3291_s8, %s2584_s15  ;;  %p2591_p0 = scmp.lt.u32.totalorder %s2584_s15, %s3291_s8 }
  0xcd   : > { %p2587_p4 = pnand %p2585_p3, %p2890_p8 }
  0xcf   : > { %p2588_p13 = pneg %p2587_p4 }
  0xd1   : > { %p2593_p1 = pnand %p2591_p0, %p2588_p13 }
  0xd3   : > { %2596 = shalt.err (!%p2593_p1)
}
  0xd4   : > { %s2597_s29 = scalar_lea.vmem %s559_s3, 16  ;;  %s2604_s30 = scalar_lea.vmem %s559_s3, 32 }
  0xd5   : > { %p2598_p5 = scmp.ne.s32.totalorder %s559_s3, %s2597_s29  ;;  %p2605_p10 = scmp.lt.s32.totalorder %s559_s3, %s559_s3 }
  0xd6   : > { %p2606_p2 = scmp.lt.s32.totalorder %s2604_s30, %s2597_s29 }
  0xd7   : > { %p2600_p7 = pnand %p2598_p5, %p2890_p8 }
  0xd8   : > { %p2607_p11 = por %p2606_p2, %p2605_p10 }
  0xd9   : > { %p2601_p9 = pneg %p2600_p7 }
  0xdb   : > { %p2608_p12 = pnand %p2607_p11, %p2601_p9 }
  0xdd   : > { %2611 = shalt.err (!%p2608_p12)
}
  0xde   : > { %2300 = dma.hbm_to_vmem [thread:$0]  (!%p2874_p6), %s3291_s8, 16, %s559_s3, [#allocation10]  }
  0xdf   : > { %s2738_s25 = smov [#allocation14]   ;;  %s2739_s7 = smov [#allocation17]  }
  0xe0   : > { %s582_s5 = sshll.u32 %s2738_s25, 4  ;;  %s610_s9 = sshll.u32 %s2739_s7, 4  ;;  %s583_s5 = int_to_ptr.vmem [resolvable:$true] %s582_s5  ;;  %s611_s9 = int_to_ptr.vmem [resolvable:$true] %s610_s9 }
  0xe1   : > { %s2612_s22 = scalar_lea.hbm %s3293_s10, 16 }
  0xe2   : > { %p2613_p3 = scmp.ne.s32.totalorder %s3293_s10, %s2612_s22  ;;  %p2619_p0 = scmp.lt.u32.totalorder %s2612_s22, %s3293_s10 }
  0xe4   : > { %p2615_p4 = pnand %p2613_p3, %p2890_p8 }
  0xe6   : > { %p2616_p13 = pneg %p2615_p4 }
  0xe8   : > { %p2621_p1 = pnand %p2619_p0, %p2616_p13 }
  0xea   : > { %2624 = shalt.err (!%p2621_p1)
}
  0xeb   : > { %s2625_s3 = scalar_lea.vmem %s583_s5, 16  ;;  %s2632_s30 = scalar_lea.vmem %s583_s5, 32 }
  0xec   : > { %p2626_p5 = scmp.ne.s32.totalorder %s583_s5, %s2625_s3  ;;  %p2633_p10 = scmp.lt.s32.totalorder %s583_s5, %s583_s5 }
  0xed   : > { %p2634_p2 = scmp.lt.s32.totalorder %s2632_s30, %s2625_s3 }
  0xee   : > { %p2628_p7 = pnand %p2626_p5, %p2890_p8 }
  0xef   : > { %p2635_p11 = por %p2634_p2, %p2633_p10 }
  0xf0   : > { %p2629_p9 = pneg %p2628_p7 }
  0xf2   : > { %p2636_p12 = pnand %p2635_p11, %p2629_p9 }
  0xf4   : > { %2639 = shalt.err (!%p2636_p12)
}
  0xf5   : > { %2306 = dma.hbm_to_vmem [thread:$0]  (!%p2874_p6), %s3293_s10, 16, %s583_s5, [#allocation13]  }
  0xf6   : > { %s2640_s18 = scalar_lea.hbm %s3297_s14, 32 }
  0xf7   : > { %p2641_p3 = scmp.ne.s32.totalorder %s3297_s14, %s2640_s18  ;;  %p2647_p0 = scmp.lt.u32.totalorder %s2640_s18, %s3297_s14 }
  0xf9   : > { %p2643_p4 = pnand %p2641_p3, %p2890_p8 }
  0xfb   : > { %p2644_p13 = pneg %p2643_p4 }
  0xfd   : > { %p2649_p1 = pnand %p2647_p0, %p2644_p13 }
  0xff   : > { %2652 = shalt.err (!%p2649_p1)
}
 0x100   : > { %s2653_s28 = scalar_lea.vmem %s611_s9, 32  ;;  %p2661_p10 = scmp.lt.s32.totalorder %s611_s9, %s611_s9 }
 0x101   : > { %p2654_p5 = scmp.ne.s32.totalorder %s611_s9, %s2653_s28  ;;  %p2662_p2 = scmp.lt.s32.totalorder %s2653_s28, %s2653_s28 }
 0x103   : > { %p2656_p7 = pnand %p2654_p5, %p2890_p8  ;;  %p2663_p11 = por %p2662_p2, %p2661_p10 }
 0x105   : > { %p2657_p9 = pneg %p2656_p7 }
 0x107   : > { %p2664_p12 = pnand %p2663_p11, %p2657_p9 }
 0x109   : > { %2667 = shalt.err (!%p2664_p12)
}
 0x10a   : > { %2312 = dma.hbm_to_vmem [thread:$0]  (!%p2874_p6), %s3297_s14, 32, %s611_s9, [#allocation16]  }
 0x10b   : > { %s2740_s3 = smov [#allocation20]   ;;  %s2668_s25 = scalar_lea.hbm %s3302_s19, 16 }
 0x10c   : > { %s641_s30 = sshll.u32 %s2740_s3, 4  ;;  %p2669_p3 = scmp.ne.s32.totalorder %s3302_s19, %s2668_s25  ;;  %s642_s30 = int_to_ptr.vmem [resolvable:$true] %s641_s30 }
 0x10d   : > { %p2675_p0 = scmp.lt.u32.totalorder %s2668_s25, %s3302_s19 }
 0x10e   : > { %p2671_p4 = pnand %p2669_p3, %p2890_p8 }
 0x110   : > { %p2672_p13 = pneg %p2671_p4 }
 0x112   : > { %p2677_p1 = pnand %p2675_p0, %p2672_p13 }
 0x114   : > { %2680 = shalt.err (!%p2677_p1)
}
 0x115   : > { %s2681_s9 = scalar_lea.vmem %s642_s30, 16  ;;  %s2688_s23 = scalar_lea.vmem %s642_s30, 32 }
 0x116   : > { %p2682_p5 = scmp.ne.s32.totalorder %s642_s30, %s2681_s9  ;;  %p2689_p10 = scmp.lt.s32.totalorder %s642_s30, %s642_s30 }
 0x117   : > { %p2690_p2 = scmp.lt.s32.totalorder %s2688_s23, %s2681_s9 }
 0x118   : > { %p2684_p7 = pnand %p2682_p5, %p2890_p8 }
 0x119   : > { %p2691_p11 = por %p2690_p2, %p2689_p10 }
 0x11a   : > { %p2685_p9 = pneg %p2684_p7 }
 0x11c   : > { %p2692_p12 = pnand %p2691_p11, %p2685_p9 }
 0x11e   : > { %2695 = shalt.err (!%p2692_p12)
}
 0x11f   : > { %2318 = dma.hbm_to_vmem [thread:$0]  (!%p2874_p6), %s3302_s19, 16, %s642_s30, [#allocation19]  }
 0x120   : > { %p3336_p3 = scmp.ne.s32.totalorder %s3327_s2, 0 }
 0x121   : > { %p3337_p4 = scmp.eq.s32.totalorder (!%p3336_p3), %s2856_s24, 0 }
 0x122   : > { %654 = sbr.rel (%p3336_p3) target bundleno = 2712 (0xa98), region = 100 }
 0x129   : > { %2701 = dma.done.wait (%p3337_p4), [#allocation5], 256   ;;  %p3338_p8 = pmov %p3337_p4 }
 0x12a   : > { %p3339_p13 = pmov %p3337_p4 }
 0x12b   : > { %2703 = vsyncadd (%p3338_p8), [#allocation5], 4294967040 }
 0x12c   : > { %2705 = dma.done.wait (%p3339_p13), [#allocation7], 48   ;;  %p3340_p0 = pmov %p3337_p4 }
 0x12e   : > { %2707 = vsyncadd (%p3340_p0), [#allocation7], 4294967248  ;;  %p3341_p1 = pmov %p3340_p0 }
 0x12f   : > { %p3342_p6 = pmov %p3340_p0 }
 0x130   : > { %2709 = dma.done.wait (%p3341_p1), [#allocation10], 32  }
 0x131   : > { %2711 = vsyncadd (%p3342_p6), [#allocation10], 4294967264  ;;  %p3343_p5 = pmov %p3340_p0 }
 0x132   : > { %p3344_p7 = pmov %p3340_p0 }
 0x133   : > { %2713 = dma.done.wait (%p3343_p5), [#allocation13], 272  }
 0x134   : > { %2715 = vsyncadd (%p3344_p7), [#allocation13], 4294967024  ;;  %p3345_p9 = pmov %p3340_p0 }
 0x135   : > { %p3346_p10 = pmov %p3340_p0 }
 0x136   : > { %2717 = dma.done.wait (%p3345_p9), [#allocation16], 160  }
 0x137   : > { %2719 = vsyncadd (%p3346_p10), [#allocation16], 4294967136  ;;  %p3347_p2 = pmov %p3340_p0 }
 0x138   : > { %p3348_p11 = pmov %p3340_p0 }
 0x139   : > { %2721 = dma.done.wait (%p3347_p2), [#allocation19], 48  }
 0x13a   : > { %2723 = vsyncadd (%p3348_p11), [#allocation19], 4294967248  ;;  %p747_p12 = scmp.lt.s32.totalorder %s2856_s24, 2  ;;  %p3349_p3 = scmp.ne.s32.totalorder %s2856_s24, 0 }
 0x13b   : > { %s3350_s21 = sld [smem:[#allocation28_spill]] (!%p3349_p3)  ;;  %v2741_v2 = vmov (!%p3349_p3), 0   ;;  %s3351_s15 = sld [smem:[#allocation29_spill]] (!%p3349_p3)  ;;  %v862_v7 = vld [vmem:[#allocation12] sm:$0xff] (!%p3349_p3)  ;;  %v863_v8 = vld [vmem:[#allocation12 + $0x8] sm:$0xff] (!%p3349_p3)  ;;  %vm871_vm0 = vcmask (!%p3349_p3), 130048  }
 0x13c   : > { %s748_s1 = scalar_select %p747_p12, %s2856_s24, 2 }
 0x13d   : > { %755 = sbr.rel (%p3349_p3) target bundleno = 681 (0x2a9), region = 148  ;;  %2367 = vset.pattern.permute.xlu1 (!%p3349_p3), %v2741_v2  ;;  %2366 = vset.pattern.permute.xlu0 (!%p3349_p3), %v2741_v2  ;;  %s3352_s0 = sld [smem:[#allocation30_spill]] (!%p3349_p3)  ;;  %v2181_v9 = vpack.c.bf16 (!%p3349_p3), %v863_v8, %v862_v7  ;;  %v1994_v14 = vld [vmem:[#allocation6] ss:$0 sm:$0xff] (!%p3349_p3)  ;;  %v1995_v15 = vld [vmem:[#allocation6 + $0x1] ss:$0 sm:$0xff] (!%p3349_p3) }
 0x13e   : > { %s2033_s2 = sshll.u32 %s748_s1, 4  ;;  %v1997_v22 = vld [vmem:[#allocation9] ss:$0 sm:$0xff] (!%p3349_p3)  ;;  %v1996_v23 = vld [vmem:[#allocation8] ss:$0 sm:$0xff] (!%p3349_p3)  ;;  %vm857_vm1 = vcmask (!%p3349_p3), 64512  }
 0x13f   : > { %s3140_s29 = scalar_lea.vmem %s3303_s20, %s2033_s2  ;;  %2182 = vmatprep.subr.bf16.mxu0 (!%p3349_p3), %v2181_v9  ;;  %v1998_v26 = vld [vmem:[#allocation11] ss:$0 sm:$0xff] (!%p3349_p3)  ;;  %v1999_v47 = vld [vmem:[#allocation14] ss:$0 sm:$0xff] (!%p3349_p3)  ;;  %vm955_vm2 = vcmask (!%p3349_p3), 261120  }
 0x140   : > { %2184 = vmatpush3.bf16.msra.mxu0 (!%p3349_p3), %v2181_v9 }
 0x141   : > { %v757_v0 = vld [vmem:[%s3350_s21 + $0x8] sm:$0xff] (!%p3349_p3)  ;;  %v756_v1 = vld [vmem:[%s3350_s21] sm:$0xff] (!%p3349_p3) }
 0x142   : > { %766 = vperm.xlu1 (!%p3349_p3), %2367, %v757_v0   ;;  %761 = vperm.xlu0 (!%p3349_p3), %2366, %v756_v1   ;;  %v776_v3 = vld [vmem:[%s3351_s15 + $0x8] sm:$0xff] (!%p3349_p3)  ;;  %v775_v4 = vld [vmem:[%s3351_s15] sm:$0xff] (!%p3349_p3) }
 0x143   : > { %v808_v5 = vld [vmem:[%s3352_s0 + $0x8] sm:$0xff] (!%p3349_p3)  ;;  %v807_v6 = vld [vmem:[%s3352_s0] sm:$0xff] (!%p3349_p3)  ;;  %v810_v10 = vld [vmem:[%s3352_s0 + $0x18] sm:$0xff] (!%p3349_p3) }
 0x144   : > { %v809_v11 = vld [vmem:[%s3352_s0 + $0x10] sm:$0xff] }
 0x146   : > { %785 = vperm.xlu1 %2367, %v776_v3   ;;  %780 = vperm.xlu0 %2366, %v775_v4  }
 0x14a   : > { %819 = vperm.xlu1 %2367, %v808_v5   ;;  %814 = vperm.xlu0 %2366, %v807_v6  }
 0x14e   : > { %829 = vperm.xlu1 %2367, %v810_v10   ;;  %824 = vperm.xlu0 %2366, %v809_v11  }
 0x1c1   : > { %v767_v12 = vpop.permute.xlu1 %766  ;;  %v762_v13 = vpop.permute.xlu0 %761 }
 0x1c2   : > { %v774_v18 = vmul.f32 %v1994_v14, %v767_v12  ;;  %v773_v19 = vmul.f32 %v1994_v14, %v762_v13 }
 0x1c5   : > { %v786_v16 = vpop.permute.xlu1 %785  ;;  %v781_v17 = vpop.permute.xlu0 %780 }
 0x1c6   : > { %v793_v20 = vmul.f32 %v1995_v15, %v786_v16  ;;  %v792_v21 = vmul.f32 %v1995_v15, %v781_v17 }
 0x1c8   : > { %v795_v24 = vadd.f32 %v793_v20, %v774_v18  ;;  %v794_v25 = vadd.f32 %v792_v21, %v773_v19 }
 0x1c9   : > { %v820_v27 = vpop.permute.xlu1 %819  ;;  %v815_v28 = vpop.permute.xlu0 %814 }
 0x1ca   : > { %v839_v29 = vmul.f32 %v1997_v22, %v820_v27  ;;  %v838_v30 = vmul.f32 %v1997_v22, %v815_v28  ;;  %v803_v31 = vadd.f32 %v1996_v23, %v794_v25  ;;  %v804_v32 = vadd.f32 %v1996_v23, %v795_v24 }
 0x1cc   : > { %v850_v33 = vadd.f32 %v1998_v26, %v839_v29  ;;  %v849_v34 = vadd.f32 %v1998_v26, %v838_v30  ;;  %v805_v35 = vmax.f32 %v803_v31, 0.0  ;;  %v806_v36 = vmax.f32 %v804_v32, 0.0 }
 0x1cd   : > { %v830_v37 = vpop.permute.xlu1 %829  ;;  %v825_v38 = vpop.permute.xlu0 %824 }
 0x1ce   : > { %v854_v39 = vmax.f32 %v850_v33, 0.0  ;;  %v853_v40 = vmax.f32 %v849_v34, 0.0  ;;  %v841_v41 = vmul.f32 %v1997_v22, %v830_v37  ;;  %v840_v42 = vmul.f32 %v1997_v22, %v825_v38  ;;  %2091 = vmatprep.mubr.msk.f32.mxu0 %vm871_vm0, %v805_v35 }
 0x1cf   : > { %2092 = vmatmul.mubr.msk.f32.vlgmr.msra.gmra.mrb[0].mxu0 %vm871_vm0, %v806_v36 }
 0x1d0   : > { %859 = vst.msk [vmem:[#allocation2 + $0x8] sm:$0xff] %vm857_vm1, %v854_v39  ;;  %858 = vst.msk [vmem:[#allocation2] sm:$0xff] %vm857_vm1, %v853_v40  ;;  %v852_v43 = vadd.f32 %v1998_v26, %v841_v41  ;;  %v851_v44 = vadd.f32 %v1998_v26, %v840_v42 }
 0x1d2   : > { %v856_v45 = vmax.f32 %v852_v43, 0.0  ;;  %v855_v46 = vmax.f32 %v851_v44, 0.0 }
 0x1d4   : > { %861 = vst.msk [vmem:[#allocation2 + $0x18] sm:$0xff] %vm857_vm1, %v856_v45  ;;  %860 = vst.msk [vmem:[#allocation2 + $0x10] sm:$0xff] %vm857_vm1, %v855_v46 }
 0x2a2   : > { %v2093_v48 = vpop.f32.mrb[0].mxu0 }
 0x2a3   : > { %v950_v49 = vadd.f32 %v2093_v48, %v1999_v47  ;;  %v944_v50 = vpop.f32.mrb[1].mxu0 }
 0x2a4   : > { %v945_v51 = vadd.f32 %v1999_v47, %v944_v50 }
 0x2a5   : > { %v954_v52 = vmax.f32 %v950_v49, 0.0 }
 0x2a6   : > { %v953_v53 = vmax.f32 %v945_v51, 0.0 }
 0x2a7   : > { %957 = vst.msk [vmem:[#allocation3 + $0x8] sm:$0xff] %vm955_vm2, %v954_v52 }
 0x2a8   : > { %956 = vst.msk [vmem:[#allocation3] sm:$0xff] %vm955_vm2, %v953_v53 }
 0x2a9 PF: > { %s3353_s25 = sld [smem:[#allocation31_spill]]  ;;  %vm964_vm3 = vcmask 130048   ;;  %v1070_v58 = vld [vmem:[#allocation15] sm:$0xff]  ;;  %vm1071_vm4 = vcmask 64512   ;;  %v1067_v60 = vld [vmem:[#allocation2 + $0x8] sm:$0xff]  ;;  %v1064_v1 = vld [vmem:[%s3294_s11 + $0x10] sm:$0xff] }
 0x2aa   : > { %v1066_v59 = vld [vmem:[#allocation2] sm:$0xff]  ;;  %2104 = vmatprep.subr.mxu1 %v1070_v58  ;;  %v1063_v62 = vld [vmem:[%s3294_s11 + $0x8] sm:$0xff]  ;;  %v1065_v2 = vld [vmem:[%s3294_s11 + $0x18] sm:$0xff]  ;;  %vm1169_vm5 = vcmask 261120   ;;  %s3354_s7 = sld [smem:[#allocation36_spill]]  ;;  %s2742_s3 = smov 64  }
 0x2ab   : > { %v1062_v61 = vld [vmem:[%s3294_s11] sm:$0xff]  ;;  %2105 = vmatpush3.msra.mxu1 %v1070_v58  ;;  %2106 = vmatprep.mubr.msk.f32.mxu1 %vm1071_vm4, %v1066_v59  ;;  %v1068_v4 = vld [vmem:[#allocation2 + $0x10] sm:$0xff]  ;;  %v2193_v5 = vpack.c.bf16 %v1065_v2, %v1064_v1  ;;  %v1069_v6 = vld [vmem:[#allocation2 + $0x18] sm:$0xff]  ;;  %s2743_s30 = smov 32   ;;  %s3355_s22 = sld [smem:[#allocation37_spill]] }
 0x2ac   : > { %v2189_v0 = vpack.c.bf16 %v1063_v62, %v1062_v61  ;;  %2107 = vmatmul.mubr.msk.f32.vlgmr.msra.gmra.mrb[0].mxu1 %vm1071_vm4, %v1067_v60  ;;  %v1280_v12 = vld [vmem:[#allocation4] sm:$0xff]  ;;  %v1363_v13 = vld [vmem:[%s3296_s13] sm:$0xff]  ;;  %v1364_v14 = vld [vmem:[%s3296_s13 + $0x8] sm:$0xff]  ;;  %s2744_s23 = smov 96  }
 0x2ad   : > { %2109 = vmatprep.mubr.msk.f32.mxu1 %vm1071_vm4, %v1068_v4  ;;  %v1365_v15 = vld [vmem:[%s3296_s13 + $0x10] sm:$0xff]  ;;  %v2205_v16 = vpack.c.bf16 %v1364_v14, %v1363_v13  ;;  %v1366_v17 = vld [vmem:[%s3296_s13 + $0x18] sm:$0xff]  ;;  %v2014_v19 = vld [vmem:[#allocation17] ss:$0 sm:$0xff] }
 0x2ae   : > { %v3174_v55 = vld [vmem:[#allocation3 + $0x8] sm:$0xff]  ;;  %2190 = vmatprep.subr.bf16.mxu1 %v2189_v0  ;;  %v2209_v18 = vpack.c.bf16 %v1366_v17, %v1365_v15  ;;  %v1281_v34 = vld [vmem:[#allocation4 + $0x8] sm:$0xff]  ;;  %v1545_v35 = vld [vmem:[%s3299_s16] sm:$0xff] }
 0x2af   : > { %v3172_v54 = vld [vmem:[#allocation3] sm:$0xff]  ;;  %v961_v63 = vld [vmem:[%s3353_s25 + $0x8] sm:$0xff]  ;;  %v962_v3 = vld [vmem:[%s3353_s25 + $0x10] sm:$0xff]  ;;  %2192 = vmatpush3.bf16.msra.mxu1 %v2189_v0 }
 0x2b0   : > { %v960_v56 = vld [vmem:[%s3353_s25] sm:$0xff]  ;;  %v2185_v57 = vpack.c.bf16 %v3174_v55, %v3172_v54  ;;  %v963_v7 = vld [vmem:[%s3353_s25 + $0x18] sm:$0xff]  ;;  %2194 = vmatprep.subr.bf16.mxu1 %v2193_v5  ;;  %2110 = vmatmul.mubr.msk.f32.gmra.mrb[2].mxu1 %vm1071_vm4, %v1069_v6  ;;  %v1546_v36 = vld [vmem:[%s3299_s16 + $0x8] sm:$0xff] }
 0x2b1   : > { %2098 = vmatprep.mubr.msk.f32.mxu0 %vm964_vm3, %v960_v56  ;;  %v2221_v37 = vpack.c.bf16 %v1546_v36, %v1545_v35  ;;  %v1455_v38 = vld [vmem:[%s3354_s7] sm:$0xff]  ;;  %v1456_v39 = vld [vmem:[%s3354_s7 + $0x8] sm:$0xff]  ;;  %v1547_v41 = vld [vmem:[%s3299_s16 + $0x10] sm:$0xff] }
 0x2b2   : > { %2186 = vmatprep.subr.bf16.mxu0 %v2185_v57  ;;  %v2213_v40 = vpack.c.bf16 %v1456_v39, %v1455_v38  ;;  %v1548_v42 = vld [vmem:[%s3299_s16 + $0x18] sm:$0xff]  ;;  %v1457_v46 = vld [vmem:[%s3354_s7 + $0x10] sm:$0xff]  ;;  %v2017_v49 = vld [vmem:[#allocation17 + $0x1] ss:$0 sm:$0xff] }
 0x2b3   : > { %2188 = vmatpush3.bf16.msra.mxu0 %v2185_v57  ;;  %2196 = vmatpush3.bf16.msra.mxu1 %v2193_v5  ;;  %v2225_v45 = vpack.c.bf16 %v1548_v42, %v1547_v41  ;;  %v1458_v47 = vld [vmem:[%s3354_s7 + $0x18] sm:$0xff]  ;;  %v2023_v58 = vld [vmem:[#allocation18 + $0x1] ss:$0 sm:$0xff]  ;;  %v2028_v42 = vld [vmem:[#allocation20] ss:$0 sm:$0xff] }
 0x2b4   : > { %2206 = vmatprep.subr.bf16.mxu1 %v2205_v16  ;;  %v2217_v48 = vpack.c.bf16 %v1458_v47, %v1457_v46 }
 0x2b6   : > { %2099 = vmatmul.mubr.msk.f32.vlgmr.msra.gmra.mrb[0].mxu0 %vm964_vm3, %v961_v63  ;;  %v2020_v63 = vld [vmem:[#allocation18] ss:$0 sm:$0xff] }
 0x2b7   : > { %2101 = vmatprep.mubr.msk.f32.mxu0 %vm964_vm3, %v962_v3 }
 0x2ba   : > { %2102 = vmatmul.mubr.msk.f32.gmra.mrb[2].mxu0 %vm964_vm3, %v963_v7 }
 0x2bb   : > { %2134 = vmatprep.mubr.msk.f32.mxu0 %vm1169_vm5, %v1280_v12 }
 0x389   : > { %v2100_v8 = vpop.f32.mrb[0].mxu0 }
 0x38a   : > { %v1043_v9 = vpop.f32.mrb[1].mxu0 }
 0x38b   : > { %2120 = vmatprep.mubr.msk.f32.mxu1 %vm1169_vm5, %v1043_v9 }
 0x38c   : > { %2121 = vmatmul.mubr.msk.f32.vlgmr.msra.gmra.mrb[0].mxu1 %vm1169_vm5, %v2100_v8 }
 0x38d   : > { %v2103_v10 = vpop.f32.mrb[2].mxu0  ;;  %2208 = vmatpush3.bf16.msra.mxu1 %v2205_v16 }
 0x38e   : > { %v1053_v11 = vpop.f32.mrb[3].mxu0  ;;  %2210 = vmatprep.subr.bf16.mxu1 %v2209_v18 }
 0x38f   : > { %2123 = vmatprep.mubr.msk.f32.mxu1 %vm1169_vm5, %v1053_v11 }
 0x390   : > { %2124 = vmatmul.mubr.msk.f32.gmra.mrb[2].mxu1 %vm1169_vm5, %v2103_v10 }
 0x391   : > { %2212 = vmatpush3.bf16.msra.mxu1 %v2209_v18 }
 0x392   : > { %2222 = vmatprep.subr.bf16.mxu1 %v2221_v37 }
 0x45f   : > { %v2122_v20 = vpop.f32.mrb[0].mxu1 }
 0x460   : > { %v1273_v21 = vadd.f32 %v2122_v20, %v2014_v19  ;;  %v1248_v22 = vpop.f32.mrb[1].mxu1 }
 0x461   : > { %v1272_v23 = vadd.f32 %v2014_v19, %v1248_v22  ;;  %v1703_v22 = vld [vmem:[%s3355_s22] sm:$0xff] }
 0x462   : > { %v1277_v24 = vmax.f32 %v1273_v21, 0.0 }
 0x463   : > { %v1276_v25 = vmax.f32 %v1272_v23, 0.0  ;;  %v2125_v26 = vpop.f32.mrb[2].mxu1  ;;  %v1704_v23 = vld [vmem:[%s3355_s22 + $0x8] sm:$0xff] }
 0x464   : > { %v1275_v27 = vadd.f32 %v2125_v26, %v2014_v19  ;;  %v1258_v28 = vpop.f32.mrb[3].mxu1  ;;  %v1706_v26 = vld [vmem:[%s3355_s22 + $0x18] sm:$0xff] }
 0x465   : > { %v2197_v29 = vpack.c.bf16 %v1277_v24, %v1276_v25  ;;  %v1274_v30 = vadd.f32 %v2014_v19, %v1258_v28  ;;  %v2229_v24 = vpack.c.bf16 %v1704_v23, %v1703_v22 }
 0x466   : > { %v1279_v31 = vmax.f32 %v1275_v27, 0.0 }
 0x467   : > { %v1278_v32 = vmax.f32 %v1274_v30, 0.0  ;;  %2198 = vmatprep.subr.bf16.mxu0 %v2197_v29 }
 0x468   : > { %2200 = vmatpush3.bf16.msra.mxu0 %v2197_v29 }
 0x469   : > { %v2201_v33 = vpack.c.bf16 %v1279_v31, %v1278_v32 }
 0x46b   : > { %2202 = vmatprep.subr.bf16.mxu0 %v2201_v33 }
 0x46c   : > { %2204 = vmatpush3.bf16.msra.mxu0 %v2201_v33 }
 0x46d   : > { %2214 = vmatprep.subr.bf16.mxu0 %v2213_v40 }
 0x46f   : > { %2135 = vmatmul.mubr.msk.f32.vlgmr.msra.gmra.mrb[4].mxu0 %vm1169_vm5, %v1281_v34 }
 0x470   : > { %2216 = vmatpush3.bf16.msra.mxu0 %v2213_v40 }
 0x471   : > { %2218 = vmatprep.subr.bf16.mxu0 %v2217_v48 }
 0x474   : > { %2220 = vmatpush3.bf16.msra.mxu0 %v2217_v48 }
 0x475   : > { %2230 = vmatprep.subr.bf16.mxu0 %v2229_v24 }
 0x542   : > { %v2136_v43 = vpop.f32.mrb[4].mxu0 }
 0x543   : > { %v1354_v44 = vpop.f32.mrb[5].mxu0 }
 0x544   : > { %2145 = vmatprep.mubr.msk.f32.mxu1 %vm1169_vm5, %v1354_v44 }
 0x545   : > { %2146 = vmatmul.mubr.msk.f32.vlgmr.msra.gmra.mrb[4].mxu1 %vm1169_vm5, %v2136_v43 }
 0x546   : > { %2224 = vmatpush3.bf16.msra.mxu1 %v2221_v37  ;;  %2167 = vmatprep.mubr.msk.f32.mxu1 %vm1169_vm5, %v3172_v54 }
 0x547   : > { %2226 = vmatprep.subr.bf16.mxu1 %v2225_v45 }
 0x54a   : > { %2228 = vmatpush3.bf16.msra.mxu1 %v2225_v45 }
 0x54d   : > { %2168 = vmatmul.mubr.msk.f32.vlgmr.msra.gmra.mrb[6].mxu1 %vm1169_vm5, %v3174_v55 }
 0x618   : > { %v2147_v50 = vpop.f32.mrb[4].mxu1 }
 0x619   : > { %v1450_v51 = vadd.f32 %v2147_v50, %v2017_v49  ;;  %v1444_v52 = vpop.f32.mrb[5].mxu1 }
 0x61a   : > { %v1445_v53 = vadd.f32 %v2017_v49, %v1444_v52 }
 0x61b   : > { %v1454_v57 = vmax.f32 %v1450_v51, 0.0 }
 0x61c   : > { %v1453_v56 = vmax.f32 %v1445_v53, 0.0 }
 0x61e   : > { %2156 = vmatprep.mubr.msk.f32.mxu0 %vm1169_vm5, %v1453_v56 }
 0x61f   : > { %2157 = vmatmul.mubr.msk.f32.vlgmr.msra.gmra.mrb[6].mxu0 %vm1169_vm5, %v1454_v57 }
 0x620   : > { %v2169_v59 = vpop.f32.mrb[6].mxu1  ;;  %2232 = vmatpush3.bf16.msra.mxu0 %v2229_v24 }
 0x621   : > { %v1626_v60 = vpop.f32.mrb[7].mxu1  ;;  %v1632_v62 = vadd.f32 %v2169_v59, %v2023_v58 }
 0x622   : > { %v1627_v61 = vadd.f32 %v2023_v58, %v1626_v60 }
 0x624   : > { %1651 = vrot.lane.b32.xlu0 %v1627_v61, %s2742_s3 }
 0x628   : > { %1653 = vrot.lane.b32.xlu0 %v1632_v62, %s2742_s3 }
 0x696   : > { %v1652_v12 = vpop.permute.xlu0 %1651 }
 0x69a   : > { %v1654_v16 = vpop.permute.xlu0 %1653 }
 0x6f2   : > { %v2158_v0 = vpop.f32.mrb[6].mxu0 }
 0x6f3   : > { %v1542_v1 = vadd.f32 %v2158_v0, %v2020_v63  ;;  %v1536_v2 = vpop.f32.mrb[7].mxu0 }
 0x6f4   : > { %v1537_v3 = vadd.f32 %v2020_v63, %v1536_v2 }
 0x6f5   : > { %v1636_v4 = vadd.f32 %v1632_v62, %v1542_v1 }
 0x6f6   : > { %v1635_v5 = vadd.f32 %v1627_v61, %v1537_v3 }
 0x6f7   : > { %v2027_v6 = vmul.f32 -1.442695, %v1636_v4 }
 0x6f8   : > { %v2026_v7 = vmul.f32 -1.442695, %v1635_v5 }
 0x6f9   : > { %2368 = vpow2.f32 %v2027_v6 }
 0x6fa   : > { %2370 = vpow2.f32 %v2026_v7 }
 0x703   : > { %v2369_v8 = vpop.eup %2368 }
 0x704   : > { %v2371_v9 = vpop.eup %2370  ;;  %v1644_v10 = vadd.f32 1.0, %v2369_v8 }
 0x705   : > { %v1643_v11 = vadd.f32 1.0, %v2371_v9 }
 0x707   : > { %2372 = vrcp.f32 %v1643_v11 }
 0x708   : > { %2374 = vrcp.f32 %v1644_v10 }
 0x711   : > { %v2373_v13 = vpop.eup %2372 }
 0x712   : > { %v1657_v14 = vmul.f32 %v2373_v13, %v1652_v12  ;;  %v2375_v15 = vpop.eup %2374  ;;  %v1671_v29 = vsub.f32 1.0, %v2373_v13 }
 0x713   : > { %v1658_v17 = vmul.f32 %v2375_v15, %v1654_v16  ;;  %v1672_v35 = vsub.f32 1.0, %v2375_v15 }
 0x714   : > { %1661 = vrot.lane.b32.xlu1 %v1657_v14, %s2742_s3 }
 0x718   : > { %1663 = vrot.lane.b32.xlu1 %v1658_v17, %s2742_s3 }
 0x71c   : > { %1683 = vrot.lane.b32.xlu1 %v3172_v54, %s2743_s30 }
 0x720   : > { %1685 = vrot.lane.b32.xlu1 %v3174_v55, %s2743_s30  ;;  %v1705_v55 = vld [vmem:[%s3355_s22 + $0x10] sm:$0xff] }
 0x721   : > { %v2233_v27 = vpack.c.bf16 %v1706_v26, %v1705_v55 }
 0x723   : > { %2234 = vmatprep.subr.bf16.mxu0 %v2233_v27 }
 0x724   : > { %2236 = vmatpush3.bf16.msra.mxu0 %v2233_v27 }
 0x786   : > { %v1662_v18 = vpop.permute.xlu1 %1661 }
 0x787   : > { %v1667_v19 = vadd.f32 %v1662_v18, %v1537_v3 }
 0x789   : > { %2376 = vtanh.f32 %v1667_v19 }
 0x78a   : > { %v1664_v20 = vpop.permute.xlu1 %1663 }
 0x78b   : > { %v1668_v21 = vadd.f32 %v1664_v20, %v1542_v1 }
 0x78d   : > { %2378 = vtanh.f32 %v1668_v21 }
 0x78e   : > { %v1684_v28 = vpop.permute.xlu1 %1683 }
 0x78f   : > { %v1689_v31 = vmul.f32 %v2373_v13, %v1684_v28 }
 0x792   : > { %v1686_v33 = vpop.permute.xlu1 %1685 }
 0x793   : > { %v2377_v25 = vpop.eup %2376  ;;  %v1690_v37 = vmul.f32 %v2375_v15, %v1686_v33 }
 0x794   : > { %1675 = vrot.lane.b32.xlu0 %v2377_v25, %s2744_s23 }
 0x797   : > { %v2379_v54 = vpop.eup %2378 }
 0x798   : > { %1677 = vrot.lane.b32.xlu0 %v2379_v54, %s2744_s23 }
 0x806   : > { %v1676_v30 = vpop.permute.xlu0 %1675 }
 0x807   : > { %v1681_v32 = vmul.f32 %v1676_v30, %v1671_v29 }
 0x809   : > { %v1691_v34 = vadd.f32 %v1689_v31, %v1681_v32 }
 0x80a   : > { %v1678_v36 = vpop.permute.xlu0 %1677 }
 0x80b   : > { %v1682_v38 = vmul.f32 %v1678_v36, %v1672_v35  ;;  %1695 = vrot.lane.b32.xlu0 %v1691_v34, %s2744_s23 }
 0x80d   : > { %v1692_v39 = vadd.f32 %v1690_v37, %v1682_v38 }
 0x80f   : > { %1697 = vrot.lane.b32.xlu1 %v1692_v39, %s2744_s23 }
 0x87d   : > { %v1696_v40 = vpop.permute.xlu0 %1695 }
 0x87e   : > { %1701 = vst.msk [vmem:[#allocation3] sm:$0xff] %vm1169_vm5, %v1696_v40  ;;  %2178 = vmatprep.mubr.msk.f32.mxu0 %vm1169_vm5, %v1696_v40 }
 0x881   : > { %v1698_v41 = vpop.permute.xlu1 %1697 }
 0x882   : > { %1702 = vst.msk [vmem:[#allocation3 + $0x8] sm:$0xff] %vm1169_vm5, %v1698_v41  ;;  %2179 = vmatmul.mubr.msk.f32.vlgmr.msra.gmra.mrb[8].mxu0 %vm1169_vm5, %v1698_v41 }
 0x955   : > { %v2180_v43 = vpop.f32.mrb[8].mxu0 }
 0x956   : > { %v1790_v44 = vadd.f32 %v2180_v43, %v2028_v42  ;;  %v1784_v45 = vpop.f32.mrb[9].mxu0 }
 0x957   : > { %v1785_v46 = vadd.f32 %v2028_v42, %v1784_v45 }
 0x958   : > { %1795 = vmax.xlane.f32.xlu1 %v1790_v44 }
 0x959   : > { %1793 = vmax.xlane.f32.xlu0 %v1785_v46 }
 0x9e5   : > { %v1796_v47 = vpop.xlane.xlu1 %1795 }
 0x9e6   : > { %v1794_v48 = vpop.xlane.xlu0 %1793  ;;  %v1798_v49 = vsub.f32 %v1790_v44, %v1796_v47 }
 0x9e7   : > { %v1797_v50 = vsub.f32 %v1785_v46, %v1794_v48 }
 0x9e8   : > { %v1801_v52 = vmul.f32 1.442695, %v1798_v49 }
 0x9e9   : > { %v1799_v51 = vmul.f32 1.442695, %v1797_v50 }
 0x9eb   : > { %2380 = vpow2.f32 %v1799_v51 }
 0x9ec   : > { %2382 = vpow2.f32 %v1801_v52 }
 0x9f5   : > { %v2381_v53 = vpop.eup %2380 }
 0x9f6   : > { %1803 = vadd.xlane.f32.xlu0 %v2381_v53  ;;  %v2383_v56 = vpop.eup %2382 }
 0x9fa   : > { %1805 = vadd.xlane.f32.xlu0 %v2383_v56 }
 0xa83   : > { %v1804_v57 = vpop.xlane.xlu0 %1803 }
 0xa84   : > { %2384 = vlog2.f32 %v1804_v57 }
 0xa87   : > { %v1806_v58 = vpop.xlane.xlu0 %1805 }
 0xa88   : > { %2386 = vlog2.f32 %v1806_v58 }
 0xa8e   : > { %v2385_v59 = vpop.eup %2384 }
 0xa8f   : > { %v1808_v60 = vmul.f32 0.6931472, %v2385_v59 }
 0xa91   : > { %v1811_v61 = vsub.f32 %v1797_v50, %v1808_v60 }
 0xa92   : > { %v2387_v62 = vpop.eup %2386 }
 0xa93   : > { %1813 = vst [vmem:[%s3140_s29] sm:$0xff] %v1811_v61  ;;  %v1810_v63 = vmul.f32 0.6931472, %v2387_v62 }
 0xa95   : > { %v1812_v0 = vsub.f32 %v1798_v49, %v1810_v63 }
 0xa97   : > { %1814 = vst [vmem:[%s3140_s29 + $0x8] sm:$0xff] %v1812_v0 }
 0xa98 PF: > { %s3356_s5 = sld [smem:[#allocation27_spill]] }
 0xa9e   : > { %s36_s1 = sadd.s32 1, %s3356_s5  }
 0xa9f   : > { %p33_p4 = scmp.ge.s32.totalorder %s36_s1, 5  }
 0xaa1   :  { %35 = sbr.rel (!%p33_p4) target bundleno = 17 (0x11), region = 176 }
 0xaa8   :  { %1836 = vsyncpa [#allocation5], 1 }
 0xaa9   :  { %1838 = vsyncpa [#allocation5 + $0x1], 1 }
 0xaaa   :  { %1839 = vsyncpa [#allocation7], 1 }
 0xaab   :  { %1840 = vsyncpa [#allocation10], 1 }
 0xaac   :  { %1841 = vsyncpa [#allocation13], 1 }
 0xaad   :  { %1842 = vsyncpa [#allocation16], 1 }
 0xaae   :  { %1843 = vsyncpa [#allocation19], 1 }

</bundles_post_ra>
